<compile_context>
chip_gen: v5e
topology: v5e:2x2
jax: 0.10.0
libtpu: 0.0.40
codegen_flags: <defaults>
</compile_context>

<pallas_src>
import math
import functools

import jax
import jax.numpy as jnp
from jax import lax
from jax.experimental import pallas as pl
from jax.experimental.pallas import tpu as pltpu

EPS = 1e-6
LOGEPS = math.log(EPS)


# ----------------------------------------------------------------------------
# Helpers
# ----------------------------------------------------------------------------
def _round_up(x, m):
    return ((x + m - 1) // m) * m


def _vmem_capacity_bytes():
    try:
        return int(pltpu.get_tpu_info().vmem_capacity_bytes)
    except Exception:
        return 128 * 1024 * 1024


def _pick_time_chunk(T, B, H, Cp, budget_bytes):
    """Largest divisor TT of T whose per-chunk VMEM footprint fits the budget and
    whose (TT*B, Cp) slab block satisfies the sublane rule ((TT*B)%8==0 or full)."""
    # per-step bytes: gx bf16 double-buffered (16H) + slab f32 double-buffered (8Cp)
    #                 + f32 hidden-chunk scratch (4H)
    bytes_per_step = B * (20 * H + 8 * Cp)
    cap = max(1, budget_bytes // max(1, bytes_per_step))
    cap = min(cap, 256, T)
    valid = [tt for tt in range(1, T + 1)
             if T % tt == 0 and (tt == T or (tt * B) % 8 == 0)]
    fitting = [tt for tt in valid if tt <= cap]
    return max(fitting) if fitting else min(valid)


# ----------------------------------------------------------------------------
# Fused kernel: LSTM recurrence over a TT-step time chunk + MDN epilogue.
# Gate columns are pre-permuted by the wrapper to [i | f | o | g]; the input
# projection x@W_ih + b is hoisted out and streamed in as bf16 `gx`.
# ----------------------------------------------------------------------------
def make_fused_kernel(*, H, K, Z, Cp, TT, B, tau, training, unroll):
    KZ = K * Z
    tau_adjust = bool(training) and tau > 0

    def kernel(gx_ref, whh_ref, wmdn_ref, bmdn_ref, h0_ref, c0_ref,
               slab_ref, hT_ref, cT_ref, h_sc, c_sc, hbuf):
        c_idx = pl.program_id(0)

        @pl.when(c_idx == 0)
        def _():
            h_sc[...] = h0_ref[...]
            c_sc[...] = c0_ref[...]

        whh = whh_ref[...]                       # (H, 4H) bf16, loaded once per chunk

        def step(tt, carry):
            h, c = carry                         # f32 (B, H) carries
            gates = (gx_ref[tt].astype(jnp.float32)
                     + jnp.dot(h.astype(jnp.bfloat16), whh,
                               preferred_element_type=jnp.float32))     # (B, 4H) f32
            # Gate order [i | f | o | g]: one contiguous sigmoid over 3H lanes.
            sig = jax.nn.sigmoid(gates[:, 0:3 * H])
            i_g = sig[:, 0:H]
            f_g = sig[:, H:2 * H]
            o_g = sig[:, 2 * H:3 * H]
            g_g = jnp.tanh(gates[:, 3 * H:4 * H])
            c_new = f_g * c + i_g * g_g
            h_new = o_g * jnp.tanh(c_new)
            row0 = tt * B
            if B % 8 == 0:
                row0 = pl.multiple_of(row0, 8)
            hbuf[pl.ds(row0, B), :] = h_new      # stash chunk hidden states (f32)
            return (h_new, c_new)

        h_fin, c_fin = lax.fori_loop(0, TT, step, (h_sc[...], c_sc[...]),
                                     unroll=unroll)
        h_sc[...] = h_fin
        c_sc[...] = c_fin

        @pl.when(c_idx == pl.num_programs(0) - 1)
        def _():
            hT_ref[...] = h_fin
            cT_ref[...] = c_fin

        # ---------------- fused MDN epilogue on the whole chunk -----------------
        mix = (jnp.dot(hbuf[...].astype(jnp.bfloat16), wmdn_ref[...],
                       preferred_element_type=jnp.float32)
               + bmdn_ref[...])                                  # (TT*B, Cp) f32

        mu = mix[:, 0:KZ]                                        # no clamp
        ls = jnp.clip(mix[:, KZ:2 * KZ], LOGEPS, -LOGEPS)
        lp_raw = jnp.clip(mix[:, 2 * KZ:3 * KZ], LOGEPS, -LOGEPS)

        # Numerically stable log_softmax over the mixture (K) axis.
        m = lp_raw[:, 0:Z]
        for k in range(1, K):
            m = jnp.maximum(m, lp_raw[:, k * Z:(k + 1) * Z])
        s = jnp.exp(lp_raw[:, 0:Z] - m)
        for k in range(1, K):
            s = s + jnp.exp(lp_raw[:, k * Z:(k + 1) * Z] - m)
        lse = m + jnp.log(s)                                     # (TT*B, Z)
        lp = lp_raw - jnp.concatenate([lse] * K, axis=-1)        # (TT*B, KZ)

        if tau_adjust:
            ls = ls + 0.5 * math.log(tau)
            lp = lp - math.log(tau)

        parts = [mu, ls, lp]
        if Cp > 3 * KZ:
            parts.append(jnp.zeros((TT * B, Cp - 3 * KZ), jnp.float32))
        # Single lane-dense store (Cp is a multiple of 128).
        slab_ref[...] = jnp.concatenate(parts, axis=-1)

    return kernel


# ----------------------------------------------------------------------------
# Parameters (PyTorch-style uniform(-1/sqrt(H), 1/sqrt(H)))
# ----------------------------------------------------------------------------
def init_params(key, z_dim, action_dim, hidden_size, n_mixture):
    D = z_dim + action_dim
    H = hidden_size
    bound = 1.0 / math.sqrt(H)
    ks = jax.random.split(key, 6)
    u = lambda k, shape: jax.random.uniform(k, shape, jnp.float32, -bound, bound)
    out_dim = 3 * n_mixture * z_dim
    return dict(
        w_ih=u(ks[0], (4 * H, D)),
        w_hh=u(ks[1], (4 * H, H)),
        b_ih=u(ks[2], (4 * H,)),
        b_hh=u(ks[3], (4 * H,)),
        w_mdn=u(ks[4], (out_dim, H)),
        b_mdn=u(ks[5], (out_dim,)),
    )


# ----------------------------------------------------------------------------
# Wrapper: MDNRNN.forward
# ----------------------------------------------------------------------------
def mdnrnn_forward(params, inpt, action_discrete=None, hidden_state=None, *,
                   z_dim, action_dim, hidden_size, n_mixture, tau,
                   training=False):
    B, T, _ = inpt.shape
    H, K, Z = hidden_size, n_mixture, z_dim
    KZ = K * Z
    Cp = _round_up(3 * KZ, 128)

    if action_discrete is None:
        action_discrete = jnp.zeros((B, T), jnp.int32)
    action = jax.nn.one_hot(action_discrete.astype(jnp.int32), action_dim,
                            dtype=jnp.float32)                    # (B, T, A)
    concat = jnp.concatenate([inpt.astype(jnp.float32), action], axis=-1)

    if hidden_state is None:
        h0 = jnp.zeros((B, H), jnp.float32)
        c0 = jnp.zeros((B, H), jnp.float32)
    else:
        h0 = hidden_state[0][0].astype(jnp.float32)
        c0 = hidden_state[1][0].astype(jnp.float32)

    # --- LSTM weight prep: transpose + permute gate columns [i,f,g,o] -> [i,f,o,g]
    def permute_gates(w_t):
        return jnp.concatenate([w_t[:, 0:H], w_t[:, H:2 * H],
                                w_t[:, 3 * H:4 * H], w_t[:, 2 * H:3 * H]],
                               axis=-1)

    w_ih_bf = permute_gates(params['w_ih'].T.astype(jnp.float32)).astype(jnp.bfloat16)
    w_hh_bf = permute_gates(params['w_hh'].T.astype(jnp.float32)).astype(jnp.bfloat16)
    b_lstm = permute_gates((params['b_ih'] + params['b_hh'])
                           .astype(jnp.float32).reshape(1, 4 * H))        # (1, 4H) f32

    # Hoisted input projection: one large (T,B,D)x(D,4H) bf16 matmul + f32 bias,
    # streamed into the kernel as bf16 (dominant HBM stream halved).
    x_tm = jnp.transpose(concat, (1, 0, 2)).astype(jnp.bfloat16)          # (T, B, D)
    gx = (jnp.einsum('tbd,dg->tbg', x_tm, w_ih_bf,
                     preferred_element_type=jnp.float32) + b_lstm
          ).astype(jnp.bfloat16)                                          # (T, B, 4H)

    # --- MDN weight prep: transpose + lane-pad to Cp columns, bf16 matmul operand.
    w_mdn_t = params['w_mdn'].T.astype(jnp.float32)                       # (H, 3KZ)
    b_mdn = params['b_mdn'].astype(jnp.float32).reshape(1, 3 * KZ)
    if Cp > 3 * KZ:
        w_mdn_t = jnp.pad(w_mdn_t, ((0, 0), (0, Cp - 3 * KZ)))
        b_mdn = jnp.pad(b_mdn, ((0, 0), (0, Cp - 3 * KZ)))
    w_mdn_bf = w_mdn_t.astype(jnp.bfloat16)                               # (H, Cp)

    # --- VMEM-budgeted time chunking + explicit vmem limit.
    vmem_cap = _vmem_capacity_bytes()                 # 128 MiB v5e/v6e, 64 MiB v7x
    vmem_limit = min(vmem_cap * 3 // 4, 112 * 1024 * 1024)
    weight_bytes = 2 * (H * 4 * H + H * Cp) * 2       # double-buffered bf16 weights
    chunk_budget = max(1 << 20, vmem_limit // 2 - weight_bytes)
    TT = _pick_time_chunk(T, B, H, Cp, chunk_budget)
    n_chunks = T // TT
    unroll = True if TT <= 8 else 8

    kernel = make_fused_kernel(H=H, K=K, Z=Z, Cp=Cp, TT=TT, B=B,
                               tau=tau, training=training, unroll=unroll)

    slab, h_n, c_n = pl.pallas_call(
        kernel,
        out_shape=(jax.ShapeDtypeStruct((T * B, Cp), jnp.float32),
                   jax.ShapeDtypeStruct((B, H), jnp.float32),
                   jax.ShapeDtypeStruct((B, H), jnp.float32)),
        grid=(n_chunks,),
        in_specs=[pl.BlockSpec((TT, B, 4 * H), lambda c: (c, 0, 0)),   # gx (bf16)
                  pl.BlockSpec((H, 4 * H), lambda c: (0, 0)),          # w_hh (bf16)
                  pl.BlockSpec((H, Cp), lambda c: (0, 0)),             # w_mdn (bf16)
                  pl.BlockSpec((1, Cp), lambda c: (0, 0)),             # b_mdn (f32)
                  pl.BlockSpec((B, H), lambda c: (0, 0)),              # h0
                  pl.BlockSpec((B, H), lambda c: (0, 0))],             # c0
        out_specs=(pl.BlockSpec((TT * B, Cp), lambda c: (c, 0)),       # fused slab
                   pl.BlockSpec((B, H), lambda c: (0, 0)),             # h_n
                   pl.BlockSpec((B, H), lambda c: (0, 0))),            # c_n
        scratch_shapes=[pltpu.VMEM((B, H), jnp.float32),               # h carry
                        pltpu.VMEM((B, H), jnp.float32),               # c carry
                        pltpu.VMEM((TT * B, H), jnp.float32)],         # chunk hiddens
        compiler_params=pltpu.CompilerParams(
            dimension_semantics=("arbitrary",),
            vmem_limit_bytes=vmem_limit),
    )(gx, w_hh_bf, w_mdn_bf, b_mdn, h0, c0)

    # Slab rows are time-major (row = t*B + b); only the small (T,B,3KZ)-ish slab
    # is transposed back to batch-first (cheap vs. a (B,T,H) transpose).
    slab_bt = jnp.transpose(slab.reshape(T, B, Cp), (1, 0, 2))            # (B, T, Cp)
    mu = slab_bt[:, :, 0:KZ].reshape(B, T, K, Z)
    logsigma = slab_bt[:, :, KZ:2 * KZ].reshape(B, T, K, Z)
    logpi = slab_bt[:, :, 2 * KZ:3 * KZ].reshape(B, T, K, Z)
    hidden_state_out = (h_n[None, ...], c_n[None, ...])                   # (1,B,H) each
    return logpi, mu, logsigma, hidden_state_out


# ----------------------------------------------------------------------------
# Pure-JAX reference for verification
# ----------------------------------------------------------------------------
def reference_forward(params, inpt, action_discrete, *, z_dim, action_dim,
                      hidden_size, n_mixture, tau, training=False):
    B, T, _ = inpt.shape
    H, K, Z = hidden_size, n_mixture, z_dim
    action = jax.nn.one_hot(action_discrete.astype(jnp.int32), action_dim,
                            dtype=jnp.float32)
    x = jnp.concatenate([inpt.astype(jnp.float32), action], axis=-1)
    w_ih, w_hh = params['w_ih'], params['w_hh']
    b = params['b_ih'] + params['b_hh']

    def step(carry, x_t):
        h, c = carry
        gates = x_t @ w_ih.T + h @ w_hh.T + b
        i, f, g, o = jnp.split(gates, 4, axis=-1)
        c = jax.nn.sigmoid(f) * c + jax.nn.sigmoid(i) * jnp.tanh(g)
        h = jax.nn.sigmoid(o) * jnp.tanh(c)
        return (h, c), h

    init = (jnp.zeros((B, H), jnp.float32), jnp.zeros((B, H), jnp.float32))
    (h_n, c_n), outs = jax.lax.scan(step, init, jnp.transpose(x, (1, 0, 2)))
    output = jnp.transpose(outs, (1, 0, 2))

    mix = output.reshape(-1, H) @ params['w_mdn'].T + params['b_mdn']
    mix = mix.reshape(B, T, -1)
    KZ = K * Z
    mu = mix[..., :KZ].reshape(B, T, K, Z)
    ls = jnp.clip(mix[..., KZ:2 * KZ], LOGEPS, -LOGEPS).reshape(B, T, K, Z)
    lp = jnp.clip(mix[..., 2 * KZ:3 * KZ], LOGEPS, -LOGEPS).reshape(B, T, K, Z)
    lp = jax.nn.log_softmax(lp, axis=2)
    if tau > 0 and training:
        lp = lp - math.log(tau)
        ls = ls + math.log(tau ** 0.5)
    return lp, mu, ls, (h_n[None], c_n[None])


# ----------------------------------------------------------------------------
if __name__ == "__main__":
    z_dim, action_dim, hidden_size, n_mixture = 8, 4, 32, 5
    tau = 1.15
    training = False        # eval mode -> no temperature adjustment
    B, T = 2, 8

    key = jax.random.PRNGKey(0)
    k_par, k_x, k_a = jax.random.split(key, 3)
    params = init_params(k_par, z_dim, action_dim, hidden_size, n_mixture)
    inpt = jax.random.normal(k_x, (B, T, z_dim), jnp.float32)
    action_discrete = jax.random.randint(k_a, (B, T), 0, action_dim)

    fwd = jax.jit(functools.partial(
        mdnrnn_forward, z_dim=z_dim, action_dim=action_dim,
        hidden_size=hidden_size, n_mixture=n_mixture, tau=tau,
        training=training))

    logpi, mu, logsigma, (h_n, c_n) = fwd(params, inpt, action_discrete)
    jax.block_until_ready((logpi, mu, logsigma, h_n, c_n))

    # shape checks (PyTorch conventions)
    assert logpi.shape == (B, T, n_mixture, z_dim)
    assert mu.shape == (B, T, n_mixture, z_dim)
    assert logsigma.shape == (B, T, n_mixture, z_dim)
    assert h_n.shape == (1, B, hidden_size) and c_n.shape == (1, B, hidden_size)

    # semantic checks
    assert bool(jnp.all(jnp.isfinite(logpi)))
    assert bool(jnp.all(jnp.isfinite(mu)))
    assert bool(jnp.all(jnp.isfinite(logsigma)))
    pi_sum = jnp.sum(jnp.exp(logpi), axis=2)               # log_softmax over mixtures
    assert bool(jnp.all(jnp.abs(pi_sum - 1.0) < 1e-3))
    assert bool(jnp.all(logsigma >= LOGEPS - 1e-5)) and bool(jnp.all(logsigma <= -LOGEPS + 1e-5))

    # compare against pure-JAX f32 reference (bf16 matmul operands loosen tolerance)
    r_lp, r_mu, r_ls, (r_h, r_c) = reference_forward(
        params, inpt, action_discrete, z_dim=z_dim, action_dim=action_dim,
        hidden_size=hidden_size, n_mixture=n_mixture, tau=tau, training=training)
    assert bool(jnp.allclose(logpi, r_lp, atol=5e-2, rtol=5e-2))
    assert bool(jnp.allclose(mu, r_mu, atol=5e-2, rtol=5e-2))
    assert bool(jnp.allclose(logsigma, r_ls, atol=5e-2, rtol=5e-2))
    assert bool(jnp.allclose(h_n, r_h, atol=5e-2, rtol=5e-2))
    assert bool(jnp.allclose(c_n, r_c, atol=5e-2, rtol=5e-2))

    print("KERNEL_OK")
</pallas_src>

<mosaic_0001>
module attributes {stable_mosaic.version = 11 : i64} {
  func.func @kernel(%arg0: i32, %arg1: memref<8x2x128xbf16, #tpu.memory_space<vmem>>, %arg2: memref<32x128xbf16, #tpu.memory_space<vmem>>, %arg3: memref<32x128xbf16, #tpu.memory_space<vmem>>, %arg4: memref<1x128xf32, #tpu.memory_space<vmem>>, %arg5: memref<2x32xf32, #tpu.memory_space<vmem>>, %arg6: memref<2x32xf32, #tpu.memory_space<vmem>>, %arg7: memref<16x128xf32, #tpu.memory_space<vmem>>, %arg8: memref<2x32xf32, #tpu.memory_space<vmem>>, %arg9: memref<2x32xf32, #tpu.memory_space<vmem>>, %arg10: memref<2x32xf32, #tpu.memory_space<vmem>>, %arg11: memref<2x32xf32, #tpu.memory_space<vmem>>, %arg12: memref<16x32xf32, #tpu.memory_space<vmem>>) attributes {dimension_semantics = [#tpu.dimension_semantics<arbitrary>], iteration_bounds = array<i64: 1>, scalar_prefetch = 0 : i64, scratch_operands = 3 : i64, tpu.core_type = #tpu.core_type<tc>, window_params = [{transform_indices = @transform_0, window_bounds = array<i64: 8, 2, 128>}, {pipeline_mode = #tpu.pipeline_mode<synchronous>, transform_indices = @transform_1, window_bounds = array<i64: 32, 128>}, {pipeline_mode = #tpu.pipeline_mode<synchronous>, transform_indices = @transform_2, window_bounds = array<i64: 32, 128>}, {pipeline_mode = #tpu.pipeline_mode<synchronous>, transform_indices = @transform_3, window_bounds = array<i64: 1, 128>}, {pipeline_mode = #tpu.pipeline_mode<synchronous>, transform_indices = @transform_4, window_bounds = array<i64: 2, 32>}, {pipeline_mode = #tpu.pipeline_mode<synchronous>, transform_indices = @transform_5, window_bounds = array<i64: 2, 32>}, {transform_indices = @transform_6, window_bounds = array<i64: 16, 128>}, {pipeline_mode = #tpu.pipeline_mode<synchronous>, transform_indices = @transform_7, window_bounds = array<i64: 2, 32>}, {pipeline_mode = #tpu.pipeline_mode<synchronous>, transform_indices = @transform_8, window_bounds = array<i64: 2, 32>}]} {
    %c0_i32 = arith.constant 0 : i32
    %0 = arith.cmpi eq, %arg0, %c0_i32 : i32
    %1 = arith.extui %0 : i1 to i32
    %c0_i32_0 = arith.constant 0 : i32
    %2 = arith.cmpi ne, %1, %c0_i32_0 : i32
    scf.if %2 {
      %c0_74 = arith.constant 0 : index
      %c0_75 = arith.constant 0 : index
      %272 = vector.load %arg5[%c0_74, %c0_75] : memref<2x32xf32, #tpu.memory_space<vmem>>, vector<2x32xf32>
      %c0_76 = arith.constant 0 : index
      %c0_77 = arith.constant 0 : index
      %273 = vector.load %arg10[%c0_76, %c0_77] : memref<2x32xf32, #tpu.memory_space<vmem>>, vector<2x32xf32>
      tpu.vector_store %arg10[%c0_76, %c0_77], %272 {strides = array<i32>} : memref<2x32xf32, #tpu.memory_space<vmem>>, vector<2x32xf32>,
      %c0_78 = arith.constant 0 : index
      %c0_79 = arith.constant 0 : index
      %274 = vector.load %arg6[%c0_78, %c0_79] : memref<2x32xf32, #tpu.memory_space<vmem>>, vector<2x32xf32>
      %c0_80 = arith.constant 0 : index
      %c0_81 = arith.constant 0 : index
      %275 = vector.load %arg11[%c0_80, %c0_81] : memref<2x32xf32, #tpu.memory_space<vmem>>, vector<2x32xf32>
      tpu.vector_store %arg11[%c0_80, %c0_81], %274 {strides = array<i32>} : memref<2x32xf32, #tpu.memory_space<vmem>>, vector<2x32xf32>,
    } else {
    }
    %c0 = arith.constant 0 : index
    %c0_1 = arith.constant 0 : index
    %3 = vector.load %arg2[%c0, %c0_1] : memref<32x128xbf16, #tpu.memory_space<vmem>>, vector<32x128xbf16>
    %c0_2 = arith.constant 0 : index
    %c0_3 = arith.constant 0 : index
    %4 = vector.load %arg10[%c0_2, %c0_3] : memref<2x32xf32, #tpu.memory_space<vmem>>, vector<2x32xf32>
    %c0_4 = arith.constant 0 : index
    %c0_5 = arith.constant 0 : index
    %5 = vector.load %arg11[%c0_4, %c0_5] : memref<2x32xf32, #tpu.memory_space<vmem>>, vector<2x32xf32>
    %c0_i32_6 = arith.constant 0 : i32
    %6 = arith.index_cast %c0_i32_6 : i32 to index
    %c0_7 = arith.constant 0 : index
    %c0_8 = arith.constant 0 : index
    %7 = vector.load %arg1[%6, %c0_7, %c0_8] : memref<8x2x128xbf16, #tpu.memory_space<vmem>>, vector<1x2x128xbf16>
    %8 = vector.shape_cast %7 : vector<1x2x128xbf16> to vector<2x128xbf16>
    %9 = arith.extf %8 : vector<2x128xbf16> to vector<2x128xf32>
    %10 = arith.truncf %4 : vector<2x32xf32> to vector<2x32xbf16>
    %cst = arith.constant dense<0.000000e+00> : vector<2x128xf32>
    %11 = tpu.matmul %10, %3, %cst {dimension_numbers = #tpu.dot_dimension_numbers<[1], [0], [0], [1], [0, 0, 1, 1], [], []>} : vector<2x32xbf16>, vector<32x128xbf16>, vector<2x128xf32> -> vector<2x128xf32>
    %12 = arith.addf %9, %11 : vector<2x128xf32>
    %13 = vector.extract_strided_slice %12 {offsets = [0, 0], sizes = [2, 96], strides = [1, 1]} : vector<2x128xf32> to vector<2x96xf32>
    %14 = arith.negf %13 : vector<2x96xf32>
    %15 = math.exp %14 : vector<2x96xf32>
    %cst_9 = arith.constant 1.000000e+00 : f32
    %16 = vector.broadcast %cst_9 : f32 to vector<2x96xf32>
    %17 = arith.addf %16, %15 : vector<2x96xf32>
    %18 = arith.divf %16, %17 : vector<2x96xf32>
    %19 = vector.extract_strided_slice %18 {offsets = [0, 0], sizes = [2, 32], strides = [1, 1]} : vector<2x96xf32> to vector<2x32xf32>
    %20 = vector.extract_strided_slice %18 {offsets = [0, 32], sizes = [2, 32], strides = [1, 1]} : vector<2x96xf32> to vector<2x32xf32>
    %21 = vector.extract_strided_slice %18 {offsets = [0, 64], sizes = [2, 32], strides = [1, 1]} : vector<2x96xf32> to vector<2x32xf32>
    %22 = vector.extract_strided_slice %12 {offsets = [0, 96], sizes = [2, 32], strides = [1, 1]} : vector<2x128xf32> to vector<2x32xf32>
    %23 = math.tanh %22 : vector<2x32xf32>
    %24 = arith.mulf %20, %5 : vector<2x32xf32>
    %25 = arith.mulf %19, %23 : vector<2x32xf32>
    %26 = arith.addf %24, %25 : vector<2x32xf32>
    %27 = math.tanh %26 : vector<2x32xf32>
    %28 = arith.mulf %21, %27 : vector<2x32xf32>
    %c2_i32 = arith.constant 2 : i32
    %29 = arith.muli %c0_i32_6, %c2_i32 : i32
    %30 = arith.index_cast %29 : i32 to index
    %c0_10 = arith.constant 0 : index
    %31 = vector.load %arg12[%30, %c0_10] : memref<16x32xf32, #tpu.memory_space<vmem>>, vector<2x32xf32>
    tpu.vector_store %arg12[%30, %c0_10], %28 {strides = array<i32>} : memref<16x32xf32, #tpu.memory_space<vmem>>, vector<2x32xf32>,
    %c1_i32 = arith.constant 1 : i32
    %32 = arith.index_cast %c1_i32 : i32 to index
    %c0_11 = arith.constant 0 : index
    %c0_12 = arith.constant 0 : index
    %33 = vector.load %arg1[%32, %c0_11, %c0_12] : memref<8x2x128xbf16, #tpu.memory_space<vmem>>, vector<1x2x128xbf16>
    %34 = vector.shape_cast %33 : vector<1x2x128xbf16> to vector<2x128xbf16>
    %35 = arith.extf %34 : vector<2x128xbf16> to vector<2x128xf32>
    %36 = arith.truncf %28 : vector<2x32xf32> to vector<2x32xbf16>
    %cst_13 = arith.constant dense<0.000000e+00> : vector<2x128xf32>
    %37 = tpu.matmul %36, %3, %cst_13 {dimension_numbers = #tpu.dot_dimension_numbers<[1], [0], [0], [1], [0, 0, 1, 1], [], []>} : vector<2x32xbf16>, vector<32x128xbf16>, vector<2x128xf32> -> vector<2x128xf32>
    %38 = arith.addf %35, %37 : vector<2x128xf32>
    %39 = vector.extract_strided_slice %38 {offsets = [0, 0], sizes = [2, 96], strides = [1, 1]} : vector<2x128xf32> to vector<2x96xf32>
    %40 = arith.negf %39 : vector<2x96xf32>
    %41 = math.exp %40 : vector<2x96xf32>
    %cst_14 = arith.constant 1.000000e+00 : f32
    %42 = vector.broadcast %cst_14 : f32 to vector<2x96xf32>
    %43 = arith.addf %42, %41 : vector<2x96xf32>
    %44 = arith.divf %42, %43 : vector<2x96xf32>
    %45 = vector.extract_strided_slice %44 {offsets = [0, 0], sizes = [2, 32], strides = [1, 1]} : vector<2x96xf32> to vector<2x32xf32>
    %46 = vector.extract_strided_slice %44 {offsets = [0, 32], sizes = [2, 32], strides = [1, 1]} : vector<2x96xf32> to vector<2x32xf32>
    %47 = vector.extract_strided_slice %44 {offsets = [0, 64], sizes = [2, 32], strides = [1, 1]} : vector<2x96xf32> to vector<2x32xf32>
    %48 = vector.extract_strided_slice %38 {offsets = [0, 96], sizes = [2, 32], strides = [1, 1]} : vector<2x128xf32> to vector<2x32xf32>
    %49 = math.tanh %48 : vector<2x32xf32>
    %50 = arith.mulf %46, %26 : vector<2x32xf32>
    %51 = arith.mulf %45, %49 : vector<2x32xf32>
    %52 = arith.addf %50, %51 : vector<2x32xf32>
    %53 = math.tanh %52 : vector<2x32xf32>
    %54 = arith.mulf %47, %53 : vector<2x32xf32>
    %c2_i32_15 = arith.constant 2 : i32
    %55 = arith.muli %c1_i32, %c2_i32_15 : i32
    %56 = arith.index_cast %55 : i32 to index
    %c0_16 = arith.constant 0 : index
    %57 = vector.load %arg12[%56, %c0_16] : memref<16x32xf32, #tpu.memory_space<vmem>>, vector<2x32xf32>
    tpu.vector_store %arg12[%56, %c0_16], %54 {strides = array<i32>} : memref<16x32xf32, #tpu.memory_space<vmem>>, vector<2x32xf32>,
    %c2_i32_17 = arith.constant 2 : i32
    %58 = arith.index_cast %c2_i32_17 : i32 to index
    %c0_18 = arith.constant 0 : index
    %c0_19 = arith.constant 0 : index
    %59 = vector.load %arg1[%58, %c0_18, %c0_19] : memref<8x2x128xbf16, #tpu.memory_space<vmem>>, vector<1x2x128xbf16>
    %60 = vector.shape_cast %59 : vector<1x2x128xbf16> to vector<2x128xbf16>
    %61 = arith.extf %60 : vector<2x128xbf16> to vector<2x128xf32>
    %62 = arith.truncf %54 : vector<2x32xf32> to vector<2x32xbf16>
    %cst_20 = arith.constant dense<0.000000e+00> : vector<2x128xf32>
    %63 = tpu.matmul %62, %3, %cst_20 {dimension_numbers = #tpu.dot_dimension_numbers<[1], [0], [0], [1], [0, 0, 1, 1], [], []>} : vector<2x32xbf16>, vector<32x128xbf16>, vector<2x128xf32> -> vector<2x128xf32>
    %64 = arith.addf %61, %63 : vector<2x128xf32>
    %65 = vector.extract_strided_slice %64 {offsets = [0, 0], sizes = [2, 96], strides = [1, 1]} : vector<2x128xf32> to vector<2x96xf32>
    %66 = arith.negf %65 : vector<2x96xf32>
    %67 = math.exp %66 : vector<2x96xf32>
    %cst_21 = arith.constant 1.000000e+00 : f32
    %68 = vector.broadcast %cst_21 : f32 to vector<2x96xf32>
    %69 = arith.addf %68, %67 : vector<2x96xf32>
    %70 = arith.divf %68, %69 : vector<2x96xf32>
    %71 = vector.extract_strided_slice %70 {offsets = [0, 0], sizes = [2, 32], strides = [1, 1]} : vector<2x96xf32> to vector<2x32xf32>
    %72 = vector.extract_strided_slice %70 {offsets = [0, 32], sizes = [2, 32], strides = [1, 1]} : vector<2x96xf32> to vector<2x32xf32>
    %73 = vector.extract_strided_slice %70 {offsets = [0, 64], sizes = [2, 32], strides = [1, 1]} : vector<2x96xf32> to vector<2x32xf32>
    %74 = vector.extract_strided_slice %64 {offsets = [0, 96], sizes = [2, 32], strides = [1, 1]} : vector<2x128xf32> to vector<2x32xf32>
    %75 = math.tanh %74 : vector<2x32xf32>
    %76 = arith.mulf %72, %52 : vector<2x32xf32>
    %77 = arith.mulf %71, %75 : vector<2x32xf32>
    %78 = arith.addf %76, %77 : vector<2x32xf32>
    %79 = math.tanh %78 : vector<2x32xf32>
    %80 = arith.mulf %73, %79 : vector<2x32xf32>
    %c2_i32_22 = arith.constant 2 : i32
    %81 = arith.muli %c2_i32_17, %c2_i32_22 : i32
    %82 = arith.index_cast %81 : i32 to index
    %c0_23 = arith.constant 0 : index
    %83 = vector.load %arg12[%82, %c0_23] : memref<16x32xf32, #tpu.memory_space<vmem>>, vector<2x32xf32>
    tpu.vector_store %arg12[%82, %c0_23], %80 {strides = array<i32>} : memref<16x32xf32, #tpu.memory_space<vmem>>, vector<2x32xf32>,
    %c3_i32 = arith.constant 3 : i32
    %84 = arith.index_cast %c3_i32 : i32 to index
    %c0_24 = arith.constant 0 : index
    %c0_25 = arith.constant 0 : index
    %85 = vector.load %arg1[%84, %c0_24, %c0_25] : memref<8x2x128xbf16, #tpu.memory_space<vmem>>, vector<1x2x128xbf16>
    %86 = vector.shape_cast %85 : vector<1x2x128xbf16> to vector<2x128xbf16>
    %87 = arith.extf %86 : vector<2x128xbf16> to vector<2x128xf32>
    %88 = arith.truncf %80 : vector<2x32xf32> to vector<2x32xbf16>
    %cst_26 = arith.constant dense<0.000000e+00> : vector<2x128xf32>
    %89 = tpu.matmul %88, %3, %cst_26 {dimension_numbers = #tpu.dot_dimension_numbers<[1], [0], [0], [1], [0, 0, 1, 1], [], []>} : vector<2x32xbf16>, vector<32x128xbf16>, vector<2x128xf32> -> vector<2x128xf32>
    %90 = arith.addf %87, %89 : vector<2x128xf32>
    %91 = vector.extract_strided_slice %90 {offsets = [0, 0], sizes = [2, 96], strides = [1, 1]} : vector<2x128xf32> to vector<2x96xf32>
    %92 = arith.negf %91 : vector<2x96xf32>
    %93 = math.exp %92 : vector<2x96xf32>
    %cst_27 = arith.constant 1.000000e+00 : f32
    %94 = vector.broadcast %cst_27 : f32 to vector<2x96xf32>
    %95 = arith.addf %94, %93 : vector<2x96xf32>
    %96 = arith.divf %94, %95 : vector<2x96xf32>
    %97 = vector.extract_strided_slice %96 {offsets = [0, 0], sizes = [2, 32], strides = [1, 1]} : vector<2x96xf32> to vector<2x32xf32>
    %98 = vector.extract_strided_slice %96 {offsets = [0, 32], sizes = [2, 32], strides = [1, 1]} : vector<2x96xf32> to vector<2x32xf32>
    %99 = vector.extract_strided_slice %96 {offsets = [0, 64], sizes = [2, 32], strides = [1, 1]} : vector<2x96xf32> to vector<2x32xf32>
    %100 = vector.extract_strided_slice %90 {offsets = [0, 96], sizes = [2, 32], strides = [1, 1]} : vector<2x128xf32> to vector<2x32xf32>
    %101 = math.tanh %100 : vector<2x32xf32>
    %102 = arith.mulf %98, %78 : vector<2x32xf32>
    %103 = arith.mulf %97, %101 : vector<2x32xf32>
    %104 = arith.addf %102, %103 : vector<2x32xf32>
    %105 = math.tanh %104 : vector<2x32xf32>
    %106 = arith.mulf %99, %105 : vector<2x32xf32>
    %c2_i32_28 = arith.constant 2 : i32
    %107 = arith.muli %c3_i32, %c2_i32_28 : i32
    %108 = arith.index_cast %107 : i32 to index
    %c0_29 = arith.constant 0 : index
    %109 = vector.load %arg12[%108, %c0_29] : memref<16x32xf32, #tpu.memory_space<vmem>>, vector<2x32xf32>
    tpu.vector_store %arg12[%108, %c0_29], %106 {strides = array<i32>} : memref<16x32xf32, #tpu.memory_space<vmem>>, vector<2x32xf32>,
    %c4_i32 = arith.constant 4 : i32
    %110 = arith.index_cast %c4_i32 : i32 to index
    %c0_30 = arith.constant 0 : index
    %c0_31 = arith.constant 0 : index
    %111 = vector.load %arg1[%110, %c0_30, %c0_31] : memref<8x2x128xbf16, #tpu.memory_space<vmem>>, vector<1x2x128xbf16>
    %112 = vector.shape_cast %111 : vector<1x2x128xbf16> to vector<2x128xbf16>
    %113 = arith.extf %112 : vector<2x128xbf16> to vector<2x128xf32>
    %114 = arith.truncf %106 : vector<2x32xf32> to vector<2x32xbf16>
    %cst_32 = arith.constant dense<0.000000e+00> : vector<2x128xf32>
    %115 = tpu.matmul %114, %3, %cst_32 {dimension_numbers = #tpu.dot_dimension_numbers<[1], [0], [0], [1], [0, 0, 1, 1], [], []>} : vector<2x32xbf16>, vector<32x128xbf16>, vector<2x128xf32> -> vector<2x128xf32>
    %116 = arith.addf %113, %115 : vector<2x128xf32>
    %117 = vector.extract_strided_slice %116 {offsets = [0, 0], sizes = [2, 96], strides = [1, 1]} : vector<2x128xf32> to vector<2x96xf32>
    %118 = arith.negf %117 : vector<2x96xf32>
    %119 = math.exp %118 : vector<2x96xf32>
    %cst_33 = arith.constant 1.000000e+00 : f32
    %120 = vector.broadcast %cst_33 : f32 to vector<2x96xf32>
    %121 = arith.addf %120, %119 : vector<2x96xf32>
    %122 = arith.divf %120, %121 : vector<2x96xf32>
    %123 = vector.extract_strided_slice %122 {offsets = [0, 0], sizes = [2, 32], strides = [1, 1]} : vector<2x96xf32> to vector<2x32xf32>
    %124 = vector.extract_strided_slice %122 {offsets = [0, 32], sizes = [2, 32], strides = [1, 1]} : vector<2x96xf32> to vector<2x32xf32>
    %125 = vector.extract_strided_slice %122 {offsets = [0, 64], sizes = [2, 32], strides = [1, 1]} : vector<2x96xf32> to vector<2x32xf32>
    %126 = vector.extract_strided_slice %116 {offsets = [0, 96], sizes = [2, 32], strides = [1, 1]} : vector<2x128xf32> to vector<2x32xf32>
    %127 = math.tanh %126 : vector<2x32xf32>
    %128 = arith.mulf %124, %104 : vector<2x32xf32>
    %129 = arith.mulf %123, %127 : vector<2x32xf32>
    %130 = arith.addf %128, %129 : vector<2x32xf32>
    %131 = math.tanh %130 : vector<2x32xf32>
    %132 = arith.mulf %125, %131 : vector<2x32xf32>
    %c2_i32_34 = arith.constant 2 : i32
    %133 = arith.muli %c4_i32, %c2_i32_34 : i32
    %134 = arith.index_cast %133 : i32 to index
    %c0_35 = arith.constant 0 : index
    %135 = vector.load %arg12[%134, %c0_35] : memref<16x32xf32, #tpu.memory_space<vmem>>, vector<2x32xf32>
    tpu.vector_store %arg12[%134, %c0_35], %132 {strides = array<i32>} : memref<16x32xf32, #tpu.memory_space<vmem>>, vector<2x32xf32>,
    %c5_i32 = arith.constant 5 : i32
    %136 = arith.index_cast %c5_i32 : i32 to index
    %c0_36 = arith.constant 0 : index
    %c0_37 = arith.constant 0 : index
    %137 = vector.load %arg1[%136, %c0_36, %c0_37] : memref<8x2x128xbf16, #tpu.memory_space<vmem>>, vector<1x2x128xbf16>
    %138 = vector.shape_cast %137 : vector<1x2x128xbf16> to vector<2x128xbf16>
    %139 = arith.extf %138 : vector<2x128xbf16> to vector<2x128xf32>
    %140 = arith.truncf %132 : vector<2x32xf32> to vector<2x32xbf16>
    %cst_38 = arith.constant dense<0.000000e+00> : vector<2x128xf32>
    %141 = tpu.matmul %140, %3, %cst_38 {dimension_numbers = #tpu.dot_dimension_numbers<[1], [0], [0], [1], [0, 0, 1, 1], [], []>} : vector<2x32xbf16>, vector<32x128xbf16>, vector<2x128xf32> -> vector<2x128xf32>
    %142 = arith.addf %139, %141 : vector<2x128xf32>
    %143 = vector.extract_strided_slice %142 {offsets = [0, 0], sizes = [2, 96], strides = [1, 1]} : vector<2x128xf32> to vector<2x96xf32>
    %144 = arith.negf %143 : vector<2x96xf32>
    %145 = math.exp %144 : vector<2x96xf32>
    %cst_39 = arith.constant 1.000000e+00 : f32
    %146 = vector.broadcast %cst_39 : f32 to vector<2x96xf32>
    %147 = arith.addf %146, %145 : vector<2x96xf32>
    %148 = arith.divf %146, %147 : vector<2x96xf32>
    %149 = vector.extract_strided_slice %148 {offsets = [0, 0], sizes = [2, 32], strides = [1, 1]} : vector<2x96xf32> to vector<2x32xf32>
    %150 = vector.extract_strided_slice %148 {offsets = [0, 32], sizes = [2, 32], strides = [1, 1]} : vector<2x96xf32> to vector<2x32xf32>
    %151 = vector.extract_strided_slice %148 {offsets = [0, 64], sizes = [2, 32], strides = [1, 1]} : vector<2x96xf32> to vector<2x32xf32>
    %152 = vector.extract_strided_slice %142 {offsets = [0, 96], sizes = [2, 32], strides = [1, 1]} : vector<2x128xf32> to vector<2x32xf32>
    %153 = math.tanh %152 : vector<2x32xf32>
    %154 = arith.mulf %150, %130 : vector<2x32xf32>
    %155 = arith.mulf %149, %153 : vector<2x32xf32>
    %156 = arith.addf %154, %155 : vector<2x32xf32>
    %157 = math.tanh %156 : vector<2x32xf32>
    %158 = arith.mulf %151, %157 : vector<2x32xf32>
    %c2_i32_40 = arith.constant 2 : i32
    %159 = arith.muli %c5_i32, %c2_i32_40 : i32
    %160 = arith.index_cast %159 : i32 to index
    %c0_41 = arith.constant 0 : index
    %161 = vector.load %arg12[%160, %c0_41] : memref<16x32xf32, #tpu.memory_space<vmem>>, vector<2x32xf32>
    tpu.vector_store %arg12[%160, %c0_41], %158 {strides = array<i32>} : memref<16x32xf32, #tpu.memory_space<vmem>>, vector<2x32xf32>,
    %c6_i32 = arith.constant 6 : i32
    %162 = arith.index_cast %c6_i32 : i32 to index
    %c0_42 = arith.constant 0 : index
    %c0_43 = arith.constant 0 : index
    %163 = vector.load %arg1[%162, %c0_42, %c0_43] : memref<8x2x128xbf16, #tpu.memory_space<vmem>>, vector<1x2x128xbf16>
    %164 = vector.shape_cast %163 : vector<1x2x128xbf16> to vector<2x128xbf16>
    %165 = arith.extf %164 : vector<2x128xbf16> to vector<2x128xf32>
    %166 = arith.truncf %158 : vector<2x32xf32> to vector<2x32xbf16>
    %cst_44 = arith.constant dense<0.000000e+00> : vector<2x128xf32>
    %167 = tpu.matmul %166, %3, %cst_44 {dimension_numbers = #tpu.dot_dimension_numbers<[1], [0], [0], [1], [0, 0, 1, 1], [], []>} : vector<2x32xbf16>, vector<32x128xbf16>, vector<2x128xf32> -> vector<2x128xf32>
    %168 = arith.addf %165, %167 : vector<2x128xf32>
    %169 = vector.extract_strided_slice %168 {offsets = [0, 0], sizes = [2, 96], strides = [1, 1]} : vector<2x128xf32> to vector<2x96xf32>
    %170 = arith.negf %169 : vector<2x96xf32>
    %171 = math.exp %170 : vector<2x96xf32>
    %cst_45 = arith.constant 1.000000e+00 : f32
    %172 = vector.broadcast %cst_45 : f32 to vector<2x96xf32>
    %173 = arith.addf %172, %171 : vector<2x96xf32>
    %174 = arith.divf %172, %173 : vector<2x96xf32>
    %175 = vector.extract_strided_slice %174 {offsets = [0, 0], sizes = [2, 32], strides = [1, 1]} : vector<2x96xf32> to vector<2x32xf32>
    %176 = vector.extract_strided_slice %174 {offsets = [0, 32], sizes = [2, 32], strides = [1, 1]} : vector<2x96xf32> to vector<2x32xf32>
    %177 = vector.extract_strided_slice %174 {offsets = [0, 64], sizes = [2, 32], strides = [1, 1]} : vector<2x96xf32> to vector<2x32xf32>
    %178 = vector.extract_strided_slice %168 {offsets = [0, 96], sizes = [2, 32], strides = [1, 1]} : vector<2x128xf32> to vector<2x32xf32>
    %179 = math.tanh %178 : vector<2x32xf32>
    %180 = arith.mulf %176, %156 : vector<2x32xf32>
    %181 = arith.mulf %175, %179 : vector<2x32xf32>
    %182 = arith.addf %180, %181 : vector<2x32xf32>
    %183 = math.tanh %182 : vector<2x32xf32>
    %184 = arith.mulf %177, %183 : vector<2x32xf32>
    %c2_i32_46 = arith.constant 2 : i32
    %185 = arith.muli %c6_i32, %c2_i32_46 : i32
    %186 = arith.index_cast %185 : i32 to index
    %c0_47 = arith.constant 0 : index
    %187 = vector.load %arg12[%186, %c0_47] : memref<16x32xf32, #tpu.memory_space<vmem>>, vector<2x32xf32>
    tpu.vector_store %arg12[%186, %c0_47], %184 {strides = array<i32>} : memref<16x32xf32, #tpu.memory_space<vmem>>, vector<2x32xf32>,
    %c7_i32 = arith.constant 7 : i32
    %188 = arith.index_cast %c7_i32 : i32 to index
    %c0_48 = arith.constant 0 : index
    %c0_49 = arith.constant 0 : index
    %189 = vector.load %arg1[%188, %c0_48, %c0_49] : memref<8x2x128xbf16, #tpu.memory_space<vmem>>, vector<1x2x128xbf16>
    %190 = vector.shape_cast %189 : vector<1x2x128xbf16> to vector<2x128xbf16>
    %191 = arith.extf %190 : vector<2x128xbf16> to vector<2x128xf32>
    %192 = arith.truncf %184 : vector<2x32xf32> to vector<2x32xbf16>
    %cst_50 = arith.constant dense<0.000000e+00> : vector<2x128xf32>
    %193 = tpu.matmul %192, %3, %cst_50 {dimension_numbers = #tpu.dot_dimension_numbers<[1], [0], [0], [1], [0, 0, 1, 1], [], []>} : vector<2x32xbf16>, vector<32x128xbf16>, vector<2x128xf32> -> vector<2x128xf32>
    %194 = arith.addf %191, %193 : vector<2x128xf32>
    %195 = vector.extract_strided_slice %194 {offsets = [0, 0], sizes = [2, 96], strides = [1, 1]} : vector<2x128xf32> to vector<2x96xf32>
    %196 = arith.negf %195 : vector<2x96xf32>
    %197 = math.exp %196 : vector<2x96xf32>
    %cst_51 = arith.constant 1.000000e+00 : f32
    %198 = vector.broadcast %cst_51 : f32 to vector<2x96xf32>
    %199 = arith.addf %198, %197 : vector<2x96xf32>
    %200 = arith.divf %198, %199 : vector<2x96xf32>
    %201 = vector.extract_strided_slice %200 {offsets = [0, 0], sizes = [2, 32], strides = [1, 1]} : vector<2x96xf32> to vector<2x32xf32>
    %202 = vector.extract_strided_slice %200 {offsets = [0, 32], sizes = [2, 32], strides = [1, 1]} : vector<2x96xf32> to vector<2x32xf32>
    %203 = vector.extract_strided_slice %200 {offsets = [0, 64], sizes = [2, 32], strides = [1, 1]} : vector<2x96xf32> to vector<2x32xf32>
    %204 = vector.extract_strided_slice %194 {offsets = [0, 96], sizes = [2, 32], strides = [1, 1]} : vector<2x128xf32> to vector<2x32xf32>
    %205 = math.tanh %204 : vector<2x32xf32>
    %206 = arith.mulf %202, %182 : vector<2x32xf32>
    %207 = arith.mulf %201, %205 : vector<2x32xf32>
    %208 = arith.addf %206, %207 : vector<2x32xf32>
    %209 = math.tanh %208 : vector<2x32xf32>
    %210 = arith.mulf %203, %209 : vector<2x32xf32>
    %c2_i32_52 = arith.constant 2 : i32
    %211 = arith.muli %c7_i32, %c2_i32_52 : i32
    %212 = arith.index_cast %211 : i32 to index
    %c0_53 = arith.constant 0 : index
    %213 = vector.load %arg12[%212, %c0_53] : memref<16x32xf32, #tpu.memory_space<vmem>>, vector<2x32xf32>
    tpu.vector_store %arg12[%212, %c0_53], %210 {strides = array<i32>} : memref<16x32xf32, #tpu.memory_space<vmem>>, vector<2x32xf32>,
    %c8_i32 = arith.constant 8 : i32
    %c0_54 = arith.constant 0 : index
    %c0_55 = arith.constant 0 : index
    %214 = vector.load %arg10[%c0_54, %c0_55] : memref<2x32xf32, #tpu.memory_space<vmem>>, vector<2x32xf32>
    tpu.vector_store %arg10[%c0_54, %c0_55], %210 {strides = array<i32>} : memref<2x32xf32, #tpu.memory_space<vmem>>, vector<2x32xf32>,
    %c0_56 = arith.constant 0 : index
    %c0_57 = arith.constant 0 : index
    %215 = vector.load %arg11[%c0_56, %c0_57] : memref<2x32xf32, #tpu.memory_space<vmem>>, vector<2x32xf32>
    tpu.vector_store %arg11[%c0_56, %c0_57], %208 {strides = array<i32>} : memref<2x32xf32, #tpu.memory_space<vmem>>, vector<2x32xf32>,
    %c0_i32_58 = arith.constant 0 : i32
    %216 = arith.cmpi eq, %arg0, %c0_i32_58 : i32
    %217 = arith.extui %216 : i1 to i32
    %c0_i32_59 = arith.constant 0 : i32
    %218 = arith.cmpi ne, %217, %c0_i32_59 : i32
    scf.if %218 {
      %c0_74 = arith.constant 0 : index
      %c0_75 = arith.constant 0 : index
      %272 = vector.load %arg8[%c0_74, %c0_75] : memref<2x32xf32, #tpu.memory_space<vmem>>, vector<2x32xf32>
      tpu.vector_store %arg8[%c0_74, %c0_75], %210 {strides = array<i32>} : memref<2x32xf32, #tpu.memory_space<vmem>>, vector<2x32xf32>,
      %c0_76 = arith.constant 0 : index
      %c0_77 = arith.constant 0 : index
      %273 = vector.load %arg9[%c0_76, %c0_77] : memref<2x32xf32, #tpu.memory_space<vmem>>, vector<2x32xf32>
      tpu.vector_store %arg9[%c0_76, %c0_77], %208 {strides = array<i32>} : memref<2x32xf32, #tpu.memory_space<vmem>>, vector<2x32xf32>,
    } else {
    }
    %c0_60 = arith.constant 0 : index
    %c0_61 = arith.constant 0 : index
    %219 = vector.load %arg12[%c0_60, %c0_61] : memref<16x32xf32, #tpu.memory_space<vmem>>, vector<16x32xf32>
    %220 = arith.truncf %219 : vector<16x32xf32> to vector<16x32xbf16>
    %c0_62 = arith.constant 0 : index
    %c0_63 = arith.constant 0 : index
    %221 = vector.load %arg3[%c0_62, %c0_63] : memref<32x128xbf16, #tpu.memory_space<vmem>>, vector<32x128xbf16>
    %cst_64 = arith.constant dense<0.000000e+00> : vector<16x128xf32>
    %222 = tpu.matmul %220, %221, %cst_64 {dimension_numbers = #tpu.dot_dimension_numbers<[1], [0], [0], [1], [0, 0, 1, 1], [], []>} : vector<16x32xbf16>, vector<32x128xbf16>, vector<16x128xf32> -> vector<16x128xf32>
    %c0_65 = arith.constant 0 : index
    %c0_66 = arith.constant 0 : index
    %223 = vector.load %arg4[%c0_65, %c0_66] : memref<1x128xf32, #tpu.memory_space<vmem>>, vector<1x128xf32>
    %224 = vector.broadcast %223 : vector<1x128xf32> to vector<16x128xf32>
    %225 = arith.addf %222, %224 : vector<16x128xf32>
    %226 = vector.extract_strided_slice %225 {offsets = [0, 0], sizes = [16, 40], strides = [1, 1]} : vector<16x128xf32> to vector<16x40xf32>
    %227 = vector.extract_strided_slice %225 {offsets = [0, 40], sizes = [16, 40], strides = [1, 1]} : vector<16x128xf32> to vector<16x40xf32>
    %cst_67 = arith.constant -13.8155107 : f32
    %cst_68 = arith.constant 13.8155107 : f32
    %228 = vector.broadcast %cst_67 : f32 to vector<16x40xf32>
    %229 = arith.maximumf %228, %227 : vector<16x40xf32>
    %230 = vector.broadcast %cst_68 : f32 to vector<16x40xf32>
    %231 = arith.minimumf %230, %229 : vector<16x40xf32>
    %232 = vector.extract_strided_slice %225 {offsets = [0, 80], sizes = [16, 40], strides = [1, 1]} : vector<16x128xf32> to vector<16x40xf32>
    %cst_69 = arith.constant -13.8155107 : f32
    %cst_70 = arith.constant 13.8155107 : f32
    %233 = vector.broadcast %cst_69 : f32 to vector<16x40xf32>
    %234 = arith.maximumf %233, %232 : vector<16x40xf32>
    %235 = vector.broadcast %cst_70 : f32 to vector<16x40xf32>
    %236 = arith.minimumf %235, %234 : vector<16x40xf32>
    %237 = vector.extract_strided_slice %236 {offsets = [0, 0], sizes = [16, 8], strides = [1, 1]} : vector<16x40xf32> to vector<16x8xf32>
    %238 = vector.extract_strided_slice %236 {offsets = [0, 8], sizes = [16, 8], strides = [1, 1]} : vector<16x40xf32> to vector<16x8xf32>
    %239 = arith.maximumf %237, %238 : vector<16x8xf32>
    %240 = vector.extract_strided_slice %236 {offsets = [0, 16], sizes = [16, 8], strides = [1, 1]} : vector<16x40xf32> to vector<16x8xf32>
    %241 = arith.maximumf %239, %240 : vector<16x8xf32>
    %242 = vector.extract_strided_slice %236 {offsets = [0, 24], sizes = [16, 8], strides = [1, 1]} : vector<16x40xf32> to vector<16x8xf32>
    %243 = arith.maximumf %241, %242 : vector<16x8xf32>
    %244 = vector.extract_strided_slice %236 {offsets = [0, 32], sizes = [16, 8], strides = [1, 1]} : vector<16x40xf32> to vector<16x8xf32>
    %245 = arith.maximumf %243, %244 : vector<16x8xf32>
    %246 = vector.extract_strided_slice %236 {offsets = [0, 0], sizes = [16, 8], strides = [1, 1]} : vector<16x40xf32> to vector<16x8xf32>
    %247 = arith.subf %246, %245 : vector<16x8xf32>
    %248 = math.exp %247 : vector<16x8xf32>
    %249 = vector.extract_strided_slice %236 {offsets = [0, 8], sizes = [16, 8], strides = [1, 1]} : vector<16x40xf32> to vector<16x8xf32>
    %250 = arith.subf %249, %245 : vector<16x8xf32>
    %251 = math.exp %250 : vector<16x8xf32>
    %252 = arith.addf %248, %251 : vector<16x8xf32>
    %253 = vector.extract_strided_slice %236 {offsets = [0, 16], sizes = [16, 8], strides = [1, 1]} : vector<16x40xf32> to vector<16x8xf32>
    %254 = arith.subf %253, %245 : vector<16x8xf32>
    %255 = math.exp %254 : vector<16x8xf32>
    %256 = arith.addf %252, %255 : vector<16x8xf32>
    %257 = vector.extract_strided_slice %236 {offsets = [0, 24], sizes = [16, 8], strides = [1, 1]} : vector<16x40xf32> to vector<16x8xf32>
    %258 = arith.subf %257, %245 : vector<16x8xf32>
    %259 = math.exp %258 : vector<16x8xf32>
    %260 = arith.addf %256, %259 : vector<16x8xf32>
    %261 = vector.extract_strided_slice %236 {offsets = [0, 32], sizes = [16, 8], strides = [1, 1]} : vector<16x40xf32> to vector<16x8xf32>
    %262 = arith.subf %261, %245 : vector<16x8xf32>
    %263 = math.exp %262 : vector<16x8xf32>
    %264 = arith.addf %260, %263 : vector<16x8xf32>
    %265 = math.log %264 : vector<16x8xf32>
    %266 = arith.addf %245, %265 : vector<16x8xf32>
    %267 = tpu.concatenate %266, %266, %266, %266, %266 in 1 : vector<16x8xf32>, vector<16x8xf32>, vector<16x8xf32>, vector<16x8xf32>, vector<16x8xf32> -> vector<16x40xf32>
    %268 = arith.subf %236, %267 : vector<16x40xf32>
    %cst_71 = arith.constant 0.000000e+00 : f32
    %269 = vector.broadcast %cst_71 : f32 to vector<16x8xf32>
    %270 = tpu.concatenate %226, %231, %268, %269 in 1 : vector<16x40xf32>, vector<16x40xf32>, vector<16x40xf32>, vector<16x8xf32> -> vector<16x128xf32>
    %c0_72 = arith.constant 0 : index
    %c0_73 = arith.constant 0 : index
    %271 = vector.load %arg7[%c0_72, %c0_73] : memref<16x128xf32, #tpu.memory_space<vmem>>, vector<16x128xf32>
    tpu.vector_store %arg7[%c0_72, %c0_73], %270 {strides = array<i32>} : memref<16x128xf32, #tpu.memory_space<vmem>>, vector<16x128xf32>,
    return
  }
  func.func @transform_0(%arg0: i32) -> (i32, i32, i32) {
    %c0_i32 = arith.constant 0 : i32
    %c0_i32_0 = arith.constant 0 : i32
    %c0_i32_1 = arith.constant 0 : i32
    return %arg0, %c0_i32, %c0_i32_0 : i32, i32, i32
  }
  func.func @transform_1(%arg0: i32) -> (i32, i32) {
    %c0_i32 = arith.constant 0 : i32
    %c0_i32_0 = arith.constant 0 : i32
    %c0_i32_1 = arith.constant 0 : i32
    return %c0_i32, %c0_i32_0 : i32, i32
  }
  func.func @transform_2(%arg0: i32) -> (i32, i32) {
    %c0_i32 = arith.constant 0 : i32
    %c0_i32_0 = arith.constant 0 : i32
    %c0_i32_1 = arith.constant 0 : i32
    return %c0_i32, %c0_i32_0 : i32, i32
  }
  func.func @transform_3(%arg0: i32) -> (i32, i32) {
    %c0_i32 = arith.constant 0 : i32
    %c0_i32_0 = arith.constant 0 : i32
    %c0_i32_1 = arith.constant 0 : i32
    return %c0_i32, %c0_i32_0 : i32, i32
  }
  func.func @transform_4(%arg0: i32) -> (i32, i32) {
    %c0_i32 = arith.constant 0 : i32
    %c0_i32_0 = arith.constant 0 : i32
    %c0_i32_1 = arith.constant 0 : i32
    return %c0_i32, %c0_i32_0 : i32, i32
  }
  func.func @transform_5(%arg0: i32) -> (i32, i32) {
    %c0_i32 = arith.constant 0 : i32
    %c0_i32_0 = arith.constant 0 : i32
    %c0_i32_1 = arith.constant 0 : i32
    return %c0_i32, %c0_i32_0 : i32, i32
  }
  func.func @transform_6(%arg0: i32) -> (i32, i32) {
    %c0_i32 = arith.constant 0 : i32
    %c0_i32_0 = arith.constant 0 : i32
    return %arg0, %c0_i32 : i32, i32
  }
  func.func @transform_7(%arg0: i32) -> (i32, i32) {
    %c0_i32 = arith.constant 0 : i32
    %c0_i32_0 = arith.constant 0 : i32
    %c0_i32_1 = arith.constant 0 : i32
    return %c0_i32, %c0_i32_0 : i32, i32
  }
  func.func @transform_8(%arg0: i32) -> (i32, i32) {
    %c0_i32 = arith.constant 0 : i32
    %c0_i32_0 = arith.constant 0 : i32
    %c0_i32_1 = arith.constant 0 : i32
    return %c0_i32, %c0_i32_0 : i32, i32
  }
}

</mosaic_0001>

<bundles_post_ra>
// kernel: mdnrnn_forward.1
= control target key start
LH: loop header
LB: loop body
LE: loop exit
PB: predicated region body
PF: predicated region fallthrough
CT: control target
= control target key end

     0   :  { %14 = vsyncpa [#allocation6], 0  ;;  %vm34_vm0 = vcmask 254976   ;;  %s1400_s0 = inlined_call_operand.vmem [shape: bf16[8,2,128], index: 0, kind: input, shape index: {}]   ;;  %s1401_s1 = inlined_call_operand.vmem [shape: bf16[32,128], index: 1, kind: input, shape index: {}]   ;;  %s1402_s2 = inlined_call_operand.vmem [shape: bf16[32,128], index: 2, kind: input, shape index: {}]   ;;  %s1403_s3 = inlined_call_operand.vmem [shape: f32[1,128], index: 3, kind: input, shape index: {}]   ;;  %s1404_s4 = inlined_call_operand.vmem [shape: f32[2,32], index: 4, kind: input, shape index: {}, may-alias: {4,5}]   ;;  %s1405_s5 = inlined_call_operand.vmem [shape: f32[2,32], index: 5, kind: input, shape index: {}, may-alias: {4,5}]   ;;  %s1406_s6 = inlined_call_operand.vmem [shape: f32[16,128], index: 6, kind: output, shape index: {0}]   ;;  %s1407_s7 = inlined_call_operand.hbm [shape: f32[2,32], index: 7, kind: output, shape index: {1}]   ;;  %s1408_s8 = inlined_call_operand.hbm [shape: f32[2,32], index: 8, kind: output, shape index: {2}]  }
   0x1   :  { %v953_v0 = vld [vmem:[%s1401_s1 + $0x8] sm:$0xff]  ;;  %v33_v1 = vld [vmem:[%s1404_s4] sm:$0x3] }
   0x2   :  { %35 = vst.msk [vmem:[#allocation2] sm:$0x3] %vm34_vm0, %v33_v1  ;;  %69 = vmatpush.bf16.msra.mxu0 %v953_v0  ;;  %v952_v2 = vld [vmem:[%s1401_s1] sm:$0xff]  ;;  %142 = vmatpush.bf16.msra.mxu1 %v953_v0 }
   0x3   :  { %15 = vsyncpa [#allocation8], 0  ;;  %210 = vmatpush.bf16.msra.mxu2 %v953_v0  ;;  %278 = vmatpush.bf16.msra.mxu3 %v953_v0  ;;  %vm59_vm1 = vcmask 261120   ;;  %v36_v5 = vld [vmem:[%s1405_s5] sm:$0x3]  ;;  %s1112_s13 = smov 32  }
   0x4   :  { %37 = vst.msk [vmem:[#allocation3] sm:$0x3] %vm34_vm0, %v36_v5  ;;  %v44_v6 = vld [vmem:[%s1400_s0] sm:$0x1]  ;;  %s1113_s5 = smov 64   ;;  %s1115_s1 = smov 112  }
   0x5   :  { %v45_v7 = vunpack.c.l.bf16 %v44_v6  ;;  %v920_v37 = vld [vmem:[%s1400_s0 + $0x1] sm:$0x1]  ;;  %s1116_s4 = smov 120   ;;  %s1118_s11 = smov 24  }
   0x6   :  { %70 = vmatpush.bf16.msra.mxu0 %v952_v2  ;;  %143 = vmatpush.bf16.msra.mxu1 %v952_v2  ;;  %v128_v38 = vunpack.c.l.bf16 %v920_v37  ;;  %s1119_s12 = smov 16   ;;  %s1120_s14 = smov 8  }
   0x7   :  { %211 = vmatpush.bf16.msra.mxu2 %v952_v2  ;;  %279 = vmatpush.bf16.msra.mxu3 %v952_v2  ;;  %s1122_s15 = smov 48   ;;  %s1123_s16 = smov 72  }
   0x8   :  { %s1124_s17 = smov 80   ;;  %s1125_s18 = smov [#allocation5]  }
   0x9   :  { %v42_v3 = vld [vmem:[#allocation2] sm:$0x3]  ;;  %s881_s19 = sshll.u32 %s1125_s18, 4  ;;  %s883_s22 = sshll.u32 %s1407_s7, 4  ;;  %s882_s19 = int_to_ptr.vmem [resolvable:$true] %s881_s19  ;;  %s884_s22 = int_to_ptr.hbm [resolvable:$true] %s883_s22 }
   0xa   :  { %346 = vmatpush.bf16.msrb.mxu0 %v953_v0  ;;  %414 = vmatpush.bf16.msrb.mxu1 %v953_v0  ;;  %v46_v4 = vpack.c.bf16 %v42_v3, %v42_v3  ;;  %v923_v3 = vld [vmem:[%s1400_s0 + $0x2] sm:$0x1]  ;;  %s1126_s7 = smov [#allocation7]   ;;  %s894_s25 = sshll.u32 %s1408_s8, 4  ;;  %s895_s25 = int_to_ptr.hbm [resolvable:$true] %s894_s25 }
   0xb   :  { %482 = vmatpush.bf16.msrb.mxu2 %v953_v0  ;;  %550 = vmatpush.bf16.msrb.mxu3 %v953_v0  ;;  %v43_v12 = vld [vmem:[#allocation3] sm:$0x3] }
   0xc   :  { %918 = vmatmul.msk.bf16.vlgmr.msra.gmra.mxu0 %vm59_vm1, %v46_v4  ;;  %v196_v4 = vunpack.c.l.bf16 %v923_v3 }
   0xe   :  { %347 = vmatpush.bf16.msrb.mxu0 %v952_v2  ;;  %415 = vmatpush.bf16.msrb.mxu1 %v952_v2 }
   0xf   :  { %483 = vmatpush.bf16.msrb.mxu2 %v952_v2  ;;  %551 = vmatpush.bf16.msrb.mxu3 %v952_v2 }
  0x89   :  { %v72_v8 = vpop.f32.mrf.mxu0 }
  0x8a   :  { %v76_v9 = vadd.f32 %v72_v8, %v45_v7 }
  0x8c   :  { %972 = vtanh.f32 %v76_v9  ;;  %v919_v13 = vmul.f32 -1.442695, %v76_v9 }
  0x8e   :  { %974 = vpow2.f32 %v919_v13 }
  0x91   :  { %v74_v10 = vpop.f32.mrf.mxu0 }
  0x92   :  { %v973_v11 = vpop.eup %972 }
  0x93   :  { %103 = vrot.lane.b32.xlu0 %v973_v11, %s1112_s13 }
  0x94   :  { %v975_v14 = vpop.eup %974 }
  0x95   :  { %v80_v15 = vadd.f32 1.0, %v975_v14 }
  0x97   :  { %976 = vrcp.f32 %v80_v15  ;;  %v92_v21 = vand.u32 2147483648, %v80_v15  ;;  %vm86_vm3 = vweird.f32 %v80_v15  ;;  %v90_v22 = vand.u32 2147483647, %v80_v15 }
  0x99   :  { %v93_v24 = vor.u32 1.1754944e-38, %v92_v21  ;;  %vm91_vm5 = vcmp.eq.f32.partialorder %v90_v22, 8.507059e+37 }
  0x9b   :  { %98 = vrot.lane.b32.xlu0 %v43_v12, %s1112_s13 }
  0x9d   :  { %v977_v16 = vpop.eup %976 }
  0x9e   :  { %v82_v17 = vmul.f32 %v977_v16, %v80_v15  ;;  %vm87_vm2 = vweird.f32 %v977_v16 }
  0x9f   :  { %vm88_vm4 = vmor %vm86_vm3, %vm87_vm2 }
  0xa0   :  { %v83_v18 = vsub.f32 1.0, %v82_v17 }
  0xa2   :  { %v84_v19 = vmul.f32 %v977_v16, %v83_v18 }
  0xa4   :  { %v85_v20 = vadd.f32 %v977_v16, %v84_v19 }
  0xa6   :  { %v89_v23 = vsel %vm88_vm4, %v977_v16, %v85_v20 }
  0xa7   :  { %v94_v26 = vsel %vm91_vm5, %v93_v24, %v89_v23 }
 0x105   :  { %v104_v25 = vpop.permute.xlu0 %103 }
 0x106   :  { %v106_v27 = vmul.f32 %v104_v25, %v94_v26 }
 0x108   :  { %108 = vrot.lane.b32.xlu1 %v106_v27, %s1112_s13 }
 0x10d   :  { %v99_v28 = vpop.permute.xlu0 %98 }
 0x10e   :  { %v101_v29 = vmul.f32 %v99_v28, %v94_v26 }
 0x17a   :  { %v109_v30 = vpop.permute.xlu1 %108 }
 0x17b   :  { %v111_v31 = vadd.f32 %v109_v30, %v101_v29 }
 0x17d   :  { %978 = vtanh.f32 %v111_v31 }
 0x183   :  { %v979_v32 = vpop.eup %978 }
 0x184   :  { %114 = vrot.lane.b32.xlu1 %v979_v32, %s1112_s13 }
 0x1f6   :  { %v115_v33 = vpop.permute.xlu1 %114 }
 0x1f7   :  { %v117_v34 = vmul.f32 %v115_v33, %v94_v26  ;;  %v926_v33 = vld [vmem:[%s1400_s0 + $0x3] sm:$0x1] }
 0x1f9   :  { %119 = vst [vmem:[#allocation1] ss:$4 sm:$0xff] %v117_v34  ;;  %v129_v35 = vpack.c.bf16 %v117_v34, %v117_v34  ;;  %v264_v34 = vunpack.c.l.bf16 %v926_v33 }
 0x1fb   :  { %131 = vrot.lane.b32.xlu2 %v129_v35, %s1113_s5 }
 0x200   :  { %v1202_v0 = vld.sshfl [vmem:[#allocation1] sm:$0xff pattern:$0x73625140] }
 0x255   :  { %v132_v36 = vpop.permute.xlu2 %131 }
 0x256   :  { %921 = vmatmul.msk.bf16.vlgmr.msra.gmra.mxu1 %vm59_vm1, %v132_v36 }
 0x2d3   :  { %v145_v39 = vpop.f32.mrf.mxu1 }
 0x2d4   :  { %v149_v40 = vadd.f32 %v145_v39, %v128_v38 }
 0x2d6   :  { %980 = vtanh.f32 %v149_v40  ;;  %v922_v43 = vmul.f32 -1.442695, %v149_v40 }
 0x2d8   :  { %982 = vpow2.f32 %v922_v43 }
 0x2db   :  { %v147_v41 = vpop.f32.mrf.mxu1 }
 0x2dc   :  { %v981_v42 = vpop.eup %980 }
 0x2dd   :  { %172 = vrot.lane.b32.xlu2 %v981_v42, %s1112_s13 }
 0x2de   :  { %v983_v44 = vpop.eup %982 }
 0x2df   :  { %v153_v45 = vadd.f32 1.0, %v983_v44 }
 0x2e1   :  { %984 = vrcp.f32 %v153_v45  ;;  %v165_v51 = vand.u32 2147483648, %v153_v45  ;;  %vm159_vm7 = vweird.f32 %v153_v45  ;;  %v163_v52 = vand.u32 2147483647, %v153_v45 }
 0x2e3   :  { %v166_v54 = vor.u32 1.1754944e-38, %v165_v51  ;;  %vm164_vm9 = vcmp.eq.f32.partialorder %v163_v52, 8.507059e+37 }
 0x2e7   :  { %v985_v46 = vpop.eup %984 }
 0x2e8   :  { %v155_v47 = vmul.f32 %v985_v46, %v153_v45  ;;  %vm160_vm6 = vweird.f32 %v985_v46 }
 0x2e9   :  { %vm161_vm8 = vmor %vm159_vm7, %vm160_vm6 }
 0x2ea   :  { %v156_v48 = vsub.f32 1.0, %v155_v47 }
 0x2ec   :  { %v157_v49 = vmul.f32 %v985_v46, %v156_v48 }
 0x2ee   :  { %v158_v50 = vadd.f32 %v985_v46, %v157_v49 }
 0x2f0   :  { %v162_v53 = vsel %vm161_vm8, %v985_v46, %v158_v50 }
 0x2f1   :  { %v167_v56 = vsel %vm164_vm9, %v166_v54, %v162_v53 }
 0x2f2   :  { %v170_v58 = vmul.f32 %v167_v56, %v111_v31 }
 0x337   :  { %v173_v55 = vpop.permute.xlu2 %172 }
 0x338   :  { %v175_v57 = vmul.f32 %v173_v55, %v167_v56 }
 0x33a   :  { %177 = vrot.lane.b32.xlu0 %v175_v57, %s1112_s13 }
 0x3ac   :  { %v178_v59 = vpop.permute.xlu0 %177 }
 0x3ad   :  { %v180_v60 = vadd.f32 %v178_v59, %v170_v58 }
 0x3af   :  { %986 = vtanh.f32 %v180_v60 }
 0x3b5   :  { %v987_v61 = vpop.eup %986 }
 0x3b6   :  { %183 = vrot.lane.b32.xlu1 %v987_v61, %s1112_s13 }
 0x428   :  { %v184_v62 = vpop.permute.xlu1 %183 }
 0x429   :  { %v186_v63 = vmul.f32 %v184_v62, %v167_v56 }
 0x42b   :  { %188 = vst [vmem:[#allocation1] ss:$4 sm:$0xff] %v186_v63  ;;  %v197_v1 = vpack.c.bf16 %v186_v63, %v186_v63  ;;  %v929_v63 = vld [vmem:[%s1400_s0 + $0x4] sm:$0x1] }
 0x42d   :  { %199 = vrot.lane.b32.xlu2 %v197_v1, %s1113_s5  ;;  %v332_v1 = vunpack.c.l.bf16 %v929_v63 }
 0x432   :  { %v1212_v30 = vld.sshfl [vmem:[#allocation1] sm:$0xff pattern:$0x73625140] }
 0x487   :  { %v200_v2 = vpop.permute.xlu2 %199 }
 0x488   :  { %924 = vmatmul.msk.bf16.vlgmr.msra.gmra.mxu2 %vm59_vm1, %v200_v2 }
 0x50b   :  { %v213_v5 = vpop.f32.mrf.mxu2 }
 0x50c   :  { %v217_v6 = vadd.f32 %v213_v5, %v196_v4 }
 0x50e   :  { %988 = vtanh.f32 %v217_v6  ;;  %v925_v9 = vmul.f32 -1.442695, %v217_v6 }
 0x510   :  { %990 = vpow2.f32 %v925_v9 }
 0x513   :  { %v215_v7 = vpop.f32.mrf.mxu2 }
 0x514   :  { %v989_v8 = vpop.eup %988 }
 0x515   :  { %240 = vrot.lane.b32.xlu0 %v989_v8, %s1112_s13 }
 0x516   :  { %v991_v10 = vpop.eup %990 }
 0x517   :  { %v221_v11 = vadd.f32 1.0, %v991_v10 }
 0x519   :  { %992 = vrcp.f32 %v221_v11  ;;  %v233_v17 = vand.u32 2147483648, %v221_v11  ;;  %vm227_vm11 = vweird.f32 %v221_v11  ;;  %v231_v18 = vand.u32 2147483647, %v221_v11 }
 0x51b   :  { %v234_v20 = vor.u32 1.1754944e-38, %v233_v17  ;;  %vm232_vm13 = vcmp.eq.f32.partialorder %v231_v18, 8.507059e+37 }
 0x51f   :  { %v993_v12 = vpop.eup %992 }
 0x520   :  { %v223_v13 = vmul.f32 %v993_v12, %v221_v11  ;;  %vm228_vm10 = vweird.f32 %v993_v12 }
 0x521   :  { %vm229_vm12 = vmor %vm227_vm11, %vm228_vm10 }
 0x522   :  { %v224_v14 = vsub.f32 1.0, %v223_v13 }
 0x524   :  { %v225_v15 = vmul.f32 %v993_v12, %v224_v14 }
 0x526   :  { %v226_v16 = vadd.f32 %v993_v12, %v225_v15 }
 0x528   :  { %v230_v19 = vsel %vm229_vm12, %v993_v12, %v226_v16 }
 0x529   :  { %v235_v22 = vsel %vm232_vm13, %v234_v20, %v230_v19 }
 0x52a   :  { %v238_v24 = vmul.f32 %v235_v22, %v180_v60 }
 0x587   :  { %v241_v21 = vpop.permute.xlu0 %240 }
 0x588   :  { %v243_v23 = vmul.f32 %v241_v21, %v235_v22 }
 0x58a   :  { %245 = vrot.lane.b32.xlu1 %v243_v23, %s1112_s13 }
 0x5fc   :  { %v246_v25 = vpop.permute.xlu1 %245 }
 0x5fd   :  { %v248_v26 = vadd.f32 %v246_v25, %v238_v24 }
 0x5ff   :  { %994 = vtanh.f32 %v248_v26 }
 0x605   :  { %v995_v27 = vpop.eup %994 }
 0x606   :  { %251 = vrot.lane.b32.xlu2 %v995_v27, %s1112_s13 }
 0x660   :  { %v252_v28 = vpop.permute.xlu2 %251 }
 0x661   :  { %v254_v29 = vmul.f32 %v252_v28, %v235_v22 }
 0x663   :  { %256 = vst [vmem:[#allocation1] ss:$4 sm:$0xff] %v254_v29  ;;  %v265_v31 = vpack.c.bf16 %v254_v29, %v254_v29 }
 0x665   :  { %267 = vrot.lane.b32.xlu0 %v265_v31, %s1113_s5  ;;  %v932_v31 = vld [vmem:[%s1400_s0 + $0x5] sm:$0x1] }
 0x66a   :  { %v1222_v60 = vld.sshfl [vmem:[#allocation1] sm:$0xff pattern:$0x73625140] }
 0x6d7   :  { %v268_v32 = vpop.permute.xlu0 %267 }
 0x6d8   :  { %927 = vmatmul.msk.bf16.vlgmr.msra.gmra.mxu3 %vm59_vm1, %v268_v32  ;;  %v400_v32 = vunpack.c.l.bf16 %v932_v31  ;;  %v938_v31 = vld [vmem:[%s1400_s0 + $0x7] sm:$0x1] }
 0x75b   :  { %v281_v35 = vpop.f32.mrf.mxu3 }
 0x75c   :  { %v285_v36 = vadd.f32 %v281_v35, %v264_v34 }
 0x75e   :  { %996 = vtanh.f32 %v285_v36  ;;  %v928_v39 = vmul.f32 -1.442695, %v285_v36 }
 0x760   :  { %998 = vpow2.f32 %v928_v39 }
 0x763   :  { %v283_v37 = vpop.f32.mrf.mxu3 }
 0x764   :  { %v997_v38 = vpop.eup %996 }
 0x765   :  { %308 = vrot.lane.b32.xlu1 %v997_v38, %s1112_s13 }
 0x766   :  { %v999_v40 = vpop.eup %998 }
 0x767   :  { %v289_v41 = vadd.f32 1.0, %v999_v40 }
 0x769   :  { %1000 = vrcp.f32 %v289_v41  ;;  %v301_v47 = vand.u32 2147483648, %v289_v41  ;;  %vm295_vm15 = vweird.f32 %v289_v41  ;;  %v299_v48 = vand.u32 2147483647, %v289_v41 }
 0x76b   :  { %v302_v50 = vor.u32 1.1754944e-38, %v301_v47  ;;  %vm300_vm3 = vcmp.eq.f32.partialorder %v299_v48, 8.507059e+37 }
 0x76f   :  { %v1001_v42 = vpop.eup %1000 }
 0x770   :  { %v291_v43 = vmul.f32 %v1001_v42, %v289_v41  ;;  %vm296_vm14 = vweird.f32 %v1001_v42 }
 0x771   :  { %vm297_vm2 = vmor %vm295_vm15, %vm296_vm14 }
 0x772   :  { %v292_v44 = vsub.f32 1.0, %v291_v43 }
 0x774   :  { %v293_v45 = vmul.f32 %v1001_v42, %v292_v44 }
 0x776   :  { %v294_v46 = vadd.f32 %v1001_v42, %v293_v45 }
 0x778   :  { %v298_v49 = vsel %vm297_vm2, %v1001_v42, %v294_v46 }
 0x779   :  { %v303_v52 = vsel %vm300_vm3, %v302_v50, %v298_v49 }
 0x77a   :  { %v306_v54 = vmul.f32 %v303_v52, %v248_v26 }
 0x7d7   :  { %v309_v51 = vpop.permute.xlu1 %308 }
 0x7d8   :  { %v311_v53 = vmul.f32 %v309_v51, %v303_v52 }
 0x7da   :  { %313 = vrot.lane.b32.xlu2 %v311_v53, %s1112_s13 }
 0x834   :  { %v314_v55 = vpop.permute.xlu2 %313 }
 0x835   :  { %v316_v56 = vadd.f32 %v314_v55, %v306_v54 }
 0x837   :  { %1002 = vtanh.f32 %v316_v56 }
 0x83d   :  { %v1003_v57 = vpop.eup %1002 }
 0x83e   :  { %319 = vrot.lane.b32.xlu0 %v1003_v57, %s1112_s13 }
 0x8b0   :  { %v320_v58 = vpop.permute.xlu0 %319 }
 0x8b1   :  { %v322_v59 = vmul.f32 %v320_v58, %v303_v52 }
 0x8b3   :  { %324 = vst [vmem:[#allocation1] ss:$4 sm:$0xff] %v322_v59  ;;  %v333_v61 = vpack.c.bf16 %v322_v59, %v322_v59 }
 0x8b5   :  { %335 = vrot.lane.b32.xlu1 %v333_v61, %s1113_s5 }
 0x8ba   :  { %v1232_v27 = vld.sshfl [vmem:[#allocation1] sm:$0xff pattern:$0x73625140] }
 0x927   :  { %v336_v62 = vpop.permute.xlu1 %335 }
 0x928   :  { %930 = vmatmul.msk.bf16.vlgmr.msrb.gmra.mxu0 %vm59_vm1, %v336_v62  ;;  %v935_v62 = vld [vmem:[%s1400_s0 + $0x6] sm:$0x1] }
 0x929   :  { %v468_v63 = vunpack.c.l.bf16 %v935_v62 }
 0x9a5   :  { %v349_v2 = vpop.f32.mrf.mxu0 }
 0x9a6   :  { %v353_v3 = vadd.f32 %v349_v2, %v332_v1 }
 0x9a8   :  { %1004 = vtanh.f32 %v353_v3  ;;  %v931_v6 = vmul.f32 -1.442695, %v353_v3 }
 0x9aa   :  { %1006 = vpow2.f32 %v931_v6 }
 0x9ad   :  { %v351_v4 = vpop.f32.mrf.mxu0 }
 0x9ae   :  { %v1005_v5 = vpop.eup %1004 }
 0x9af   :  { %376 = vrot.lane.b32.xlu2 %v1005_v5, %s1112_s13 }
 0x9b0   :  { %v1007_v7 = vpop.eup %1006 }
 0x9b1   :  { %v357_v8 = vadd.f32 1.0, %v1007_v7 }
 0x9b3   :  { %1008 = vrcp.f32 %v357_v8  ;;  %v369_v14 = vand.u32 2147483648, %v357_v8  ;;  %vm363_vm5 = vweird.f32 %v357_v8  ;;  %v367_v15 = vand.u32 2147483647, %v357_v8 }
 0x9b5   :  { %v370_v17 = vor.u32 1.1754944e-38, %v369_v14  ;;  %vm368_vm7 = vcmp.eq.f32.partialorder %v367_v15, 8.507059e+37 }
 0x9b9   :  { %v1009_v9 = vpop.eup %1008 }
 0x9ba   :  { %v359_v10 = vmul.f32 %v1009_v9, %v357_v8  ;;  %vm364_vm4 = vweird.f32 %v1009_v9 }
 0x9bb   :  { %vm365_vm6 = vmor %vm363_vm5, %vm364_vm4 }
 0x9bc   :  { %v360_v11 = vsub.f32 1.0, %v359_v10 }
 0x9be   :  { %v361_v12 = vmul.f32 %v1009_v9, %v360_v11 }
 0x9c0   :  { %v362_v13 = vadd.f32 %v1009_v9, %v361_v12 }
 0x9c2   :  { %v366_v16 = vsel %vm365_vm6, %v1009_v9, %v362_v13  ;;  %vm842_vm6 = vcmask 64512  }
 0x9c3   :  { %v371_v19 = vsel %vm368_vm7, %v370_v17, %v366_v16  ;;  %vm845_vm7 = vcmask 130048  }
 0x9c4   :  { %v374_v21 = vmul.f32 %v371_v19, %v316_v56 }
 0xa09   :  { %v377_v18 = vpop.permute.xlu2 %376 }
 0xa0a   :  { %v379_v20 = vmul.f32 %v377_v18, %v371_v19 }
 0xa0c   :  { %381 = vrot.lane.b32.xlu0 %v379_v20, %s1112_s13 }
 0xa7e   :  { %v382_v22 = vpop.permute.xlu0 %381 }
 0xa7f   :  { %v384_v23 = vadd.f32 %v382_v22, %v374_v21 }
 0xa81   :  { %1010 = vtanh.f32 %v384_v23 }
 0xa87   :  { %v1011_v24 = vpop.eup %1010 }
 0xa88   :  { %387 = vrot.lane.b32.xlu1 %v1011_v24, %s1112_s13 }
 0xafa   :  { %v388_v25 = vpop.permute.xlu1 %387 }
 0xafb   :  { %v390_v26 = vmul.f32 %v388_v25, %v371_v19 }
 0xafd   :  { %392 = vst [vmem:[#allocation1] ss:$4 sm:$0xff] %v390_v26  ;;  %v401_v28 = vpack.c.bf16 %v390_v26, %v390_v26 }
 0xaff   :  { %403 = vrot.lane.b32.xlu2 %v401_v28, %s1113_s5 }
 0xb04   :  { %v1242_v58 = vld.sshfl [vmem:[#allocation1] sm:$0xff pattern:$0x73625140] }
 0xb59   :  { %v404_v29 = vpop.permute.xlu2 %403 }
 0xb5a   :  { %933 = vmatmul.msk.bf16.vlgmr.msrb.gmra.mxu1 %vm59_vm1, %v404_v29 }
 0xbd7   :  { %v417_v33 = vpop.f32.mrf.mxu1 }
 0xbd8   :  { %v421_v34 = vadd.f32 %v417_v33, %v400_v32  ;;  %v536_v32 = vunpack.c.l.bf16 %v938_v31 }
 0xbda   :  { %1012 = vtanh.f32 %v421_v34  ;;  %v934_v37 = vmul.f32 -1.442695, %v421_v34 }
 0xbdc   :  { %1014 = vpow2.f32 %v934_v37 }
 0xbdf   :  { %v419_v35 = vpop.f32.mrf.mxu1 }
 0xbe0   :  { %v1013_v36 = vpop.eup %1012 }
 0xbe1   :  { %444 = vrot.lane.b32.xlu0 %v1013_v36, %s1112_s13 }
 0xbe2   :  { %v1015_v38 = vpop.eup %1014 }
 0xbe3   :  { %v425_v39 = vadd.f32 1.0, %v1015_v38 }
 0xbe5   :  { %1016 = vrcp.f32 %v425_v39  ;;  %v437_v45 = vand.u32 2147483648, %v425_v39  ;;  %vm431_vm9 = vweird.f32 %v425_v39  ;;  %v435_v46 = vand.u32 2147483647, %v425_v39 }
 0xbe7   :  { %v438_v48 = vor.u32 1.1754944e-38, %v437_v45  ;;  %vm436_vm11 = vcmp.eq.f32.partialorder %v435_v46, 8.507059e+37 }
 0xbeb   :  { %v1017_v40 = vpop.eup %1016 }
 0xbec   :  { %v427_v41 = vmul.f32 %v1017_v40, %v425_v39  ;;  %vm432_vm8 = vweird.f32 %v1017_v40 }
 0xbed   :  { %vm433_vm10 = vmor %vm431_vm9, %vm432_vm8  ;;  %vm848_vm8 = vcmask 195584   ;;  %vm866_vm9 = vcmask 654336  }
 0xbee   :  { %v428_v42 = vsub.f32 1.0, %v427_v41 }
 0xbf0   :  { %v429_v43 = vmul.f32 %v1017_v40, %v428_v42 }
 0xbf2   :  { %v430_v44 = vadd.f32 %v1017_v40, %v429_v43 }
 0xbf4   :  { %v434_v47 = vsel %vm433_vm10, %v1017_v40, %v430_v44  ;;  %vm869_vm10 = vcmask 982016  }
 0xbf5   :  { %v439_v50 = vsel %vm436_vm11, %v438_v48, %v434_v47 }
 0xbf6   :  { %v442_v52 = vmul.f32 %v439_v50, %v384_v23 }
 0xc53   :  { %v445_v49 = vpop.permute.xlu0 %444 }
 0xc54   :  { %v447_v51 = vmul.f32 %v445_v49, %v439_v50 }
 0xc56   :  { %449 = vrot.lane.b32.xlu1 %v447_v51, %s1112_s13 }
 0xcc8   :  { %v450_v53 = vpop.permute.xlu1 %449 }
 0xcc9   :  { %v452_v54 = vadd.f32 %v450_v53, %v442_v52 }
 0xccb   :  { %1018 = vtanh.f32 %v452_v54 }
 0xcd1   :  { %v1019_v55 = vpop.eup %1018 }
 0xcd2   :  { %455 = vrot.lane.b32.xlu2 %v1019_v55, %s1112_s13 }
 0xd2c   :  { %v456_v56 = vpop.permute.xlu2 %455 }
 0xd2d   :  { %v458_v57 = vmul.f32 %v456_v56, %v439_v50 }
 0xd2f   :  { %460 = vst [vmem:[#allocation1] ss:$4 sm:$0xff] %v458_v57  ;;  %v469_v59 = vpack.c.bf16 %v458_v57, %v458_v57 }
 0xd31   :  { %471 = vrot.lane.b32.xlu0 %v469_v59, %s1113_s5 }
 0xd36   :  { %v461_v26 = vld.sshfl [vmem:[#allocation1] sm:$0xff pattern:$0x73625140] }
 0xda3   :  { %v472_v61 = vpop.permute.xlu0 %471 }
 0xda4   :  { %936 = vmatmul.msk.bf16.vlgmr.msrb.gmra.mxu2 %vm59_vm1, %v472_v61 }
 0xe27   :  { %v485_v1 = vpop.f32.mrf.mxu2 }
 0xe28   :  { %v489_v2 = vadd.f32 %v485_v1, %v468_v63 }
 0xe2a   :  { %1020 = vtanh.f32 %v489_v2  ;;  %v937_v5 = vmul.f32 -1.442695, %v489_v2 }
 0xe2c   :  { %1022 = vpow2.f32 %v937_v5  ;;  %v954_v5 = vld [vmem:[%s1402_s2] sm:$0xff] }
 0xe2f   :  { %v487_v3 = vpop.f32.mrf.mxu2 }
 0xe30   :  { %v1021_v4 = vpop.eup %1020 }
 0xe31   :  { %512 = vrot.lane.b32.xlu1 %v1021_v4, %s1112_s13 }
 0xe32   :  { %v1023_v6 = vpop.eup %1022 }
 0xe33   :  { %v493_v7 = vadd.f32 1.0, %v1023_v6 }
 0xe35   :  { %1024 = vrcp.f32 %v493_v7  ;;  %v505_v13 = vand.u32 2147483648, %v493_v7  ;;  %vm499_vm13 = vweird.f32 %v493_v7  ;;  %v503_v14 = vand.u32 2147483647, %v493_v7 }
 0xe37   :  { %v506_v16 = vor.u32 1.1754944e-38, %v505_v13  ;;  %vm504_vm15 = vcmp.eq.f32.partialorder %v503_v14, 8.507059e+37 }
 0xe3b   :  { %v1025_v8 = vpop.eup %1024 }
 0xe3c   :  { %v495_v9 = vmul.f32 %v1025_v8, %v493_v7  ;;  %vm500_vm12 = vweird.f32 %v1025_v8 }
 0xe3d   :  { %vm501_vm14 = vmor %vm499_vm13, %vm500_vm12 }
 0xe3e   :  { %v496_v10 = vsub.f32 1.0, %v495_v9 }
 0xe40   :  { %v497_v11 = vmul.f32 %v1025_v8, %v496_v10  ;;  %v971_v10 = vld [vmem:[%s1403_s3] ss:$0 sm:$0xff]  ;;  %s1117_s3 = smov 96  }
 0xe42   :  { %v498_v12 = vadd.f32 %v1025_v8, %v497_v11 }
 0xe44   :  { %v502_v15 = vsel %vm501_vm14, %v1025_v8, %v498_v12 }
 0xe45   :  { %v507_v18 = vsel %vm504_vm15, %v506_v16, %v502_v15 }
 0xe46   :  { %v510_v20 = vmul.f32 %v507_v18, %v452_v54 }
 0xea3   :  { %v513_v17 = vpop.permute.xlu1 %512 }
 0xea4   :  { %v515_v19 = vmul.f32 %v513_v17, %v507_v18 }
 0xea6   :  { %517 = vrot.lane.b32.xlu2 %v515_v19, %s1112_s13 }
 0xf00   :  { %v518_v21 = vpop.permute.xlu2 %517 }
 0xf01   :  { %v520_v22 = vadd.f32 %v518_v21, %v510_v20 }
 0xf03   :  { %1026 = vtanh.f32 %v520_v22 }
 0xf09   :  { %v1027_v23 = vpop.eup %1026 }
 0xf0a   :  { %523 = vrot.lane.b32.xlu0 %v1027_v23, %s1112_s13 }
 0xf7c   :  { %v524_v24 = vpop.permute.xlu0 %523 }
 0xf7d   :  { %v526_v25 = vmul.f32 %v524_v24, %v507_v18 }
 0xf7f   :  { %528 = vst [vmem:[#allocation1] ss:$4 sm:$0xff] %v526_v25  ;;  %v537_v28 = vpack.c.bf16 %v526_v25, %v526_v25 }
 0xf81   :  { %539 = vrot.lane.b32.xlu1 %v537_v28, %s1113_s5 }
 0xf86   :  { %v529_v37 = vld.sshfl [vmem:[#allocation1] sm:$0xff pattern:$0x73625140] }
 0xff3   :  { %v540_v29 = vpop.permute.xlu1 %539 }
 0xff4   :  { %939 = vmatmul.msk.bf16.vlgmr.msrb.gmra.mxu3 %vm59_vm1, %v540_v29 }
0x1077   :  { %v553_v33 = vpop.f32.mrf.mxu3 }
0x1078   :  { %v557_v34 = vadd.f32 %v553_v33, %v536_v32 }
0x107a   :  { %1028 = vtanh.f32 %v557_v34  ;;  %v940_v38 = vmul.f32 -1.442695, %v557_v34 }
0x107c   :  { %1030 = vpow2.f32 %v940_v38 }
0x107f   :  { %v555_v35 = vpop.f32.mrf.mxu3 }
0x1080   :  { %v1029_v36 = vpop.eup %1028 }
0x1081   :  { %580 = vrot.lane.b32.xlu2 %v1029_v36, %s1112_s13 }
0x1082   :  { %v1031_v39 = vpop.eup %1030 }
0x1083   :  { %v561_v40 = vadd.f32 1.0, %v1031_v39 }
0x1085   :  { %1032 = vrcp.f32 %v561_v40  ;;  %v573_v46 = vand.u32 2147483648, %v561_v40  ;;  %vm567_vm3 = vweird.f32 %v561_v40 }
0x1089   :  { %121 = vrot.lane.b32.xlu2 %v1202_v0, %s1113_s5  ;;  %v571_v0 = vand.u32 2147483647, %v561_v40 }
0x108b   :  { %v1033_v41 = vpop.eup %1032  ;;  %vm572_vm5 = vcmp.eq.f32.partialorder %v571_v0, 8.507059e+37 }
0x108c   :  { %v563_v42 = vmul.f32 %v1033_v41, %v561_v40  ;;  %vm568_vm2 = vweird.f32 %v1033_v41 }
0x108d   :  { %vm569_vm4 = vmor %vm567_vm3, %vm568_vm2 }
0x108e   :  { %v564_v43 = vsub.f32 1.0, %v563_v42 }
0x1090   :  { %v565_v44 = vmul.f32 %v1033_v41, %v564_v43 }
0x1091   :  { %326 = vrot.lane.b32.xlu2 %v1232_v27, %s1113_s5  ;;  %v574_v27 = vor.u32 1.1754944e-38, %v573_v46 }
0x1092   :  { %v566_v45 = vadd.f32 %v1033_v41, %v565_v44 }
0x1094   :  { %v570_v47 = vsel %vm569_vm4, %v1033_v41, %v566_v45 }
0x1095   :  { %v575_v49 = vsel %vm572_vm5, %v574_v27, %v570_v47 }
0x1096   :  { %v578_v54 = vmul.f32 %v575_v49, %v520_v22 }
0x1099   :  { %530 = vrot.lane.b32.xlu2 %v529_v37, %s1113_s5 }
0x10db   :  { %v581_v48 = vpop.permute.xlu2 %580 }
0x10dc   :  { %v583_v50 = vmul.f32 %v581_v48, %v575_v49 }
0x10de   :  { %585 = vrot.lane.b32.xlu0 %v583_v50, %s1112_s13 }
0x10e3   :  { %v122_v51 = vpop.permute.xlu2 %121 }
0x10e4   :  { %125 = vst.msk [vmem:[#allocation4] sm:$0x3] %vm34_vm0, %v122_v51 }
0x10e6   :  { %190 = vrot.lane.b32.xlu0 %v1212_v30, %s1113_s5 }
0x10eb   :  { %v327_v52 = vpop.permute.xlu2 %326 }
0x10ec   :  { %329 = vst.msk [vmem:[#allocation4 + $0x6] sm:$0x3] %vm34_vm0, %v327_v52 }
0x10ee   :  { %394 = vrot.lane.b32.xlu0 %v1242_v58, %s1113_s5  ;;  %v955_v58 = vld [vmem:[%s1402_s2 + $0x8] sm:$0xff]  ;;  %s1114_s2 = smov 104  }
0x10ef   :  { %662 = vmatpush.bf16.msra.mxu0 %v955_v58 }
0x10f3   :  { %v531_v53 = vpop.permute.xlu2 %530  ;;  %663 = vmatpush.bf16.msra.mxu0 %v954_v5 }
0x10f4   :  { %533 = vst.msk [vmem:[#allocation4 + $0xc] sm:$0x3] %vm34_vm0, %v531_v53 }
0x1150   :  { %v586_v55 = vpop.permute.xlu0 %585 }
0x1151   :  { %v588_v56 = vadd.f32 %v586_v55, %v578_v54 }
0x1153   :  { %1034 = vtanh.f32 %v588_v56 }
0x1158   :  { %v191_v57 = vpop.permute.xlu0 %190 }
0x1159   :  { %v1035_v59 = vpop.eup %1034  ;;  %193 = vst.msk [vmem:[#allocation4 + $0x2] sm:$0x3] %vm34_vm0, %v191_v57 }
0x115a   :  { %591 = vrot.lane.b32.xlu1 %v1035_v59, %s1112_s13 }
0x1160   :  { %v395_v30 = vpop.permute.xlu0 %394 }
0x1161   :  { %397 = vst.msk [vmem:[#allocation4 + $0x8] sm:$0x3] %vm34_vm0, %v395_v30 }
0x1162   :  { %258 = vrot.lane.b32.xlu1 %v1222_v60, %s1113_s5 }
0x116a   :  { %462 = vrot.lane.b32.xlu1 %v461_v26, %s1113_s5 }
0x11cc   :  { %v592_v61 = vpop.permute.xlu1 %591 }
0x11cd   :  { %v594_v62 = vmul.f32 %v592_v61, %v575_v49 }
0x11cf   :  { %596 = vst [vmem:[#allocation1] ss:$4 sm:$0xff] %v594_v62 }
0x11d4   :  { %v259_v63 = vpop.permute.xlu1 %258 }
0x11d5   :  { %261 = vst.msk [vmem:[#allocation4 + $0x4] sm:$0x3] %vm34_vm0, %v259_v63 }
0x11d6   :  { %v597_v1 = vld.sshfl [vmem:[#allocation1] sm:$0xff pattern:$0x73625140] }
0x11d7   :  { %598 = vrot.lane.b32.xlu0 %v597_v1, %s1113_s5  ;;  %602 = vst [vmem:[#allocation1] ss:$4 sm:$0xff] %v594_v62 }
0x11dc   :  { %v463_v2 = vpop.permute.xlu1 %462  ;;  %v630_v7 = vld [vmem:[#allocation4] sm:$0xff] }
0x11dd   :  { %465 = vst.msk [vmem:[#allocation4 + $0xa] sm:$0x3] %vm34_vm0, %v463_v2 }
0x11de   :  { %v1283_v60 = vld.sshfl [vmem:[#allocation1] sm:$0xff pattern:$0x73625140] }
0x11df   :  { %609 = vst [vmem:[#allocation1] ss:$4 sm:$0xff] %v588_v56 }
0x11e6   :  { %v1285_v3 = vld.sshfl [vmem:[#allocation1] sm:$0xff pattern:$0x73625140] }
0x11e7   :  { %618 = vst [vmem:[#allocation1] ss:$4 sm:$0xff] %v594_v62 }
0x11ee   :  { %v1287_v4 = vld.sshfl [vmem:[#allocation1] sm:$0xff pattern:$0x73625140] }
0x11ef   :  { %624 = vst [vmem:[#allocation1] ss:$4 sm:$0xff] %v588_v56 }
0x1249   :  { %v599_v6 = vpop.permute.xlu0 %598 }
0x124a   :  { %601 = vst.msk [vmem:[#allocation4 + $0xe] sm:$0x3] %vm34_vm0, %v599_v6 }
0x1251   :  { %v631_v8 = vld [vmem:[#allocation4 + $0x8] sm:$0xff] }
0x1252   :  { %v632_v9 = vpack.c.bf16 %v631_v8, %v630_v7 }
0x1254   :  { %949 = vmatmul.msk.bf16.vlgmr.msra.gmra.mxu0 %vm59_vm1, %v632_v9 }
0x12d1   :  { %v665_v11 = vpop.f32.mrf.mxu0 }
0x12d2   :  { %v1297_v12 = vadd.f32 %v971_v10, %v665_v11 }
0x12d4   :  { %v1300_v13 = vclamps-f32 %v1297_v12, 13.815511 }
0x12d6   :  { %692 = vrot.lane.b32.xlu2 %v1300_v13, %s1114_s2  ;;  %684 = vrot.lane.b32.xlu0 %v1300_v13, %s1115_s1 }
0x12d7   :  { %676 = vrot.lane.b32.xlu1 %v1300_v13, %s1116_s4 }
0x12d9   :  { %v667_v14 = vpop.f32.mrf.mxu0 }
0x12da   :  { %v1308_v15 = vadd.f32 %v971_v10, %v667_v14 }
0x12dc   :  { %v1311_v16 = vclamps-f32 %v1308_v15, 13.815511 }
0x12de   :  { %678 = vrot.lane.b32.xlu2 %v1311_v16, %s1116_s4  ;;  %694 = vrot.lane.b32.xlu0 %v1311_v16, %s1114_s2 }
0x12df   :  { %686 = vrot.lane.b32.xlu1 %v1311_v16, %s1115_s1 }
0x12e6   :  { %702 = vrot.lane.b32.xlu2 %v1311_v16, %s1117_s3 }
0x12e7   :  { %700 = vrot.lane.b32.xlu1 %v1300_v13, %s1117_s3 }
0x1330   :  { %v693_v18 = vpop.permute.xlu2 %692 }
0x1338   :  { %v679_v23 = vpop.permute.xlu2 %678 }
0x1339   :  { %v683_v24 = vmax.f32 %v1311_v16, %v679_v23 }
0x1340   :  { %v703_v33 = vpop.permute.xlu2 %702 }
0x1348   :  { %v685_v21 = vpop.permute.xlu0 %684 }
0x1349   :  { %v677_v17 = vpop.permute.xlu1 %676 }
0x134a   :  { %v682_v19 = vmax.f32 %v1300_v13, %v677_v17 }
0x134c   :  { %v690_v22 = vmax.f32 %v682_v19, %v685_v21 }
0x134e   :  { %v698_v25 = vmax.f32 %v690_v22, %v693_v18 }
0x1350   :  { %v695_v31 = vpop.permute.xlu0 %694 }
0x1351   :  { %v687_v20 = vpop.permute.xlu1 %686 }
0x1352   :  { %v691_v28 = vmax.f32 %v683_v24, %v687_v20 }
0x1354   :  { %v699_v32 = vmax.f32 %v691_v28, %v695_v31 }
0x1356   :  { %v1330_v34 = vmax.f32 %v699_v32, %v703_v33 }
0x1358   :  { %v709_v9 = vsub.f32 %v1311_v16, %v1330_v34 }
0x1359   :  { %v701_v26 = vpop.permute.xlu1 %700 }
0x135a   :  { %v1325_v29 = vmax.f32 %v698_v25, %v701_v26  ;;  %v712_v14 = vmul.f32 1.442695, %v709_v9 }
0x135c   :  { %760 = vrot.lane.b32.xlu1 %v1325_v29, %s1118_s11  ;;  %738 = vrot.lane.b32.xlu2 %v1325_v29, %s1119_s12  ;;  %v708_v2 = vsub.f32 %v1300_v13, %v1325_v29 }
0x135d   :  { %716 = vrot.lane.b32.xlu0 %v1325_v29, %s1120_s14 }
0x135e   :  { %v710_v6 = vmul.f32 1.442695, %v708_v2 }
0x1364   :  { %718 = vrot.lane.b32.xlu1 %v1330_v34, %s1120_s14  ;;  %762 = vrot.lane.b32.xlu2 %v1330_v34, %s1118_s11 }
0x1365   :  { %740 = vrot.lane.b32.xlu0 %v1330_v34, %s1119_s12 }
0x136c   :  { %784 = vrot.lane.b32.xlu1 %v1330_v34, %s1112_s13 }
0x136d   :  { %782 = vrot.lane.b32.xlu0 %v1325_v29, %s1112_s13  ;;  %s1121_s13 = smov 56  }
0x13b6   :  { %v739_v35 = vpop.permute.xlu2 %738 }
0x13b7   :  { %v744_v36 = vsub.f32 %v1300_v13, %v739_v35 }
0x13b9   :  { %v746_v37 = vmul.f32 1.442695, %v744_v36 }
0x13bb   :  { %1036 = vpow2.f32 %v746_v37 }
0x13be   :  { %v763_v38 = vpop.permute.xlu2 %762 }
0x13bf   :  { %v767_v39 = vsub.f32 %v1311_v16, %v763_v38 }
0x13c1   :  { %v1037_v40 = vpop.eup %1036  ;;  %v770_v41 = vmul.f32 1.442695, %v767_v39 }
0x13c2   :  { %752 = vrot.lane.b32.xlu1 %v1037_v40, %s1115_s1 }
0x13c3   :  { %1038 = vpow2.f32 %v770_v41 }
0x13c9   :  { %v1039_v42 = vpop.eup %1038 }
0x13ca   :  { %776 = vrot.lane.b32.xlu1 %v1039_v42, %s1114_s2 }
0x13ce   :  { %v761_v43 = vpop.permute.xlu1 %760 }
0x13cf   :  { %v766_v44 = vsub.f32 %v1300_v13, %v761_v43  ;;  %v717_v45 = vpop.permute.xlu0 %716 }
0x13d0   :  { %v722_v46 = vsub.f32 %v1300_v13, %v717_v45 }
0x13d1   :  { %v768_v0 = vmul.f32 1.442695, %v766_v44 }
0x13d2   :  { %v724_v47 = vmul.f32 1.442695, %v722_v46 }
0x13d3   :  { %1040 = vpow2.f32 %v768_v0 }
0x13d4   :  { %1042 = vpow2.f32 %v724_v47 }
0x13d6   :  { %v719_v27 = vpop.permute.xlu1 %718 }
0x13d7   :  { %v723_v48 = vsub.f32 %v1311_v16, %v719_v27  ;;  %v741_v49 = vpop.permute.xlu0 %740 }
0x13d8   :  { %v745_v50 = vsub.f32 %v1311_v16, %v741_v49 }
0x13d9   :  { %v1041_v51 = vpop.eup %1040  ;;  %v726_v52 = vmul.f32 1.442695, %v723_v48 }
0x13da   :  { %v1043_v53 = vpop.eup %1042  ;;  %v748_v54 = vmul.f32 1.442695, %v745_v50  ;;  %774 = vrot.lane.b32.xlu0 %v1041_v51, %s1114_s2 }
0x13db   :  { %1044 = vpow2.f32 %v726_v52  ;;  %730 = vrot.lane.b32.xlu2 %v1043_v53, %s1116_s4  ;;  %v625_v52 = vld.sshfl [vmem:[#allocation1] sm:$0xff pattern:$0x73625140] }
0x13dc   :  { %1046 = vpow2.f32 %v748_v54 }
0x13de   :  { %v785_v55 = vpop.permute.xlu1 %784 }
0x13df   :  { %v789_v56 = vsub.f32 %v1311_v16, %v785_v55  ;;  %v783_v57 = vpop.permute.xlu0 %782 }
0x13e0   :  { %v788_v59 = vsub.f32 %v1300_v13, %v783_v57 }
0x13e1   :  { %v1045_v30 = vpop.eup %1044  ;;  %v792_v58 = vmul.f32 1.442695, %v789_v56 }
0x13e2   :  { %v1047_v61 = vpop.eup %1046  ;;  %v790_v62 = vmul.f32 1.442695, %v788_v59  ;;  %732 = vrot.lane.b32.xlu0 %v1045_v30, %s1116_s4 }
0x13e3   :  { %1048 = vpow2.f32 %v792_v58  ;;  %754 = vrot.lane.b32.xlu2 %v1047_v61, %s1115_s1 }
0x13e4   :  { %1050 = vpow2.f32 %v790_v62 }
0x13e5   :  { %1052 = vpow2.f32 %v710_v6 }
0x13e6   :  { %1054 = vpow2.f32 %v712_v14 }
0x13e9   :  { %v1049_v63 = vpop.eup %1048 }
0x13ea   :  { %v1051_v1 = vpop.eup %1050  ;;  %798 = vrot.lane.b32.xlu0 %v1049_v63, %s1117_s3 }
0x13eb   :  { %796 = vrot.lane.b32.xlu2 %v1051_v1, %s1117_s3  ;;  %v1053_v8 = vpop.eup %1052 }
0x13ec   :  { %v1055_v22 = vpop.eup %1054 }
0x1434   :  { %v753_v11 = vpop.permute.xlu1 %752 }
0x1435   :  { %v731_v5 = vpop.permute.xlu2 %730 }
0x1436   :  { %v736_v10 = vadd.f32 %v1053_v8, %v731_v5 }
0x1438   :  { %v758_v17 = vadd.f32 %v753_v11, %v736_v10 }
0x143c   :  { %v777_v31 = vpop.permute.xlu1 %776 }
0x143d   :  { %v755_v7 = vpop.permute.xlu2 %754 }
0x1445   :  { %v797_v20 = vpop.permute.xlu2 %796 }
0x144c   :  { %v775_v18 = vpop.permute.xlu0 %774 }
0x144d   :  { %v780_v19 = vadd.f32 %v775_v18, %v758_v17 }
0x144f   :  { %v802_v21 = vadd.f32 %v797_v20, %v780_v19 }
0x1451   :  { %1056 = vlog2.f32 %v802_v21 }
0x1454   :  { %v733_v23 = vpop.permute.xlu0 %732 }
0x1455   :  { %v737_v24 = vadd.f32 %v1055_v22, %v733_v23 }
0x1457   :  { %v1057_v25 = vpop.eup %1056  ;;  %v759_v26 = vadd.f32 %v755_v7, %v737_v24 }
0x1458   :  { %v805_v28 = vmul.f32 0.6931472, %v1057_v25 }
0x1459   :  { %v781_v33 = vadd.f32 %v777_v31, %v759_v26 }
0x145a   :  { %v808_v32 = vadd.f32 %v805_v28, %v1325_v29 }
0x145c   :  { %v799_v35 = vpop.permute.xlu0 %798  ;;  %824 = vrot.lane.b32.xlu2 %v808_v32, %s1113_s5  ;;  %818 = vrot.lane.b32.xlu0 %v808_v32, %s1121_s13 }
0x145d   :  { %v803_v36 = vadd.f32 %v799_v35, %v781_v33  ;;  %812 = vrot.lane.b32.xlu1 %v808_v32, %s1122_s15 }
0x145f   :  { %1058 = vlog2.f32 %v803_v36 }
0x1465   :  { %v1059_v37 = vpop.eup %1058  ;;  %830 = vrot.lane.b32.xlu1 %v808_v32, %s1123_s16 }
0x1466   :  { %v807_v38 = vmul.f32 0.6931472, %v1059_v37 }
0x1468   :  { %v809_v39 = vadd.f32 %v807_v38, %v1330_v34 }
0x146a   :  { %814 = vrot.lane.b32.xlu2 %v809_v39, %s1122_s15  ;;  %826 = vrot.lane.b32.xlu0 %v809_v39, %s1113_s5 }
0x146d   :  { %820 = vrot.lane.b32.xlu1 %v809_v39, %s1121_s13 }
0x1472   :  { %832 = vrot.lane.b32.xlu2 %v809_v39, %s1123_s16  ;;  %836 = vrot.lane.b32.xlu0 %v808_v32, %s1124_s17 }
0x1475   :  { %838 = vrot.lane.b32.xlu1 %v809_v39, %s1124_s17 }
0x147d   :  { %620 = vrot.lane.b32.xlu1 %v1287_v4, %s1113_s5 }
0x1485   :  { %611 = vrot.lane.b32.xlu1 %v1285_v3, %s1117_s3 }
0x14b6   :  { %v825_v40 = vpop.permute.xlu2 %824 }
0x14c4   :  { %v815_v43 = vpop.permute.xlu2 %814 }
0x14cc   :  { %v833_v49 = vpop.permute.xlu2 %832 }
0x14ce   :  { %v819_v41 = vpop.permute.xlu0 %818 }
0x14cf   :  { %v813_v29 = vpop.permute.xlu1 %812 }
0x14d0   :  { %v843_v45 = vsel %vm842_vm6, %v813_v29, %v819_v41 }
0x14d1   :  { %v846_v0 = vsel %vm845_vm7, %v843_v45, %v825_v40 }
0x14d7   :  { %v831_v42 = vpop.permute.xlu1 %830 }
0x14d8   :  { %v849_v47 = vsel %vm848_vm8, %v846_v0, %v831_v42 }
0x14dc   :  { %v827_v34 = vpop.permute.xlu0 %826 }
0x14df   :  { %v821_v44 = vpop.permute.xlu1 %820 }
0x14e0   :  { %v844_v46 = vsel %vm842_vm6, %v815_v43, %v821_v44 }
0x14e1   :  { %v847_v27 = vsel %vm845_vm7, %v844_v46, %v827_v34 }
0x14e2   :  { %v850_v50 = vsel %vm848_vm8, %v847_v27, %v833_v49 }
0x14e4   :  { %v837_v48 = vpop.permute.xlu0 %836 }
0x14e5   :  { %v851_v4 = vsel %vm59_vm1, %v849_v47, %v837_v48 }
0x14e6   :  { %855 = vrot.lane.b32.xlu2 %v851_v4, %s1124_s17 }
0x14e7   :  { %v839_v3 = vpop.permute.xlu1 %838 }
0x14e8   :  { %v852_v51 = vsel %vm59_vm1, %v850_v50, %v839_v3  ;;  %vm863_vm1 = vcmask 326656  }
0x14e9   :  { %857 = vrot.lane.b32.xlu0 %v852_v51, %s1124_s17  ;;  %v864_v57 = vsel %vm863_vm1, %v1297_v12, %v1300_v13  ;;  %v865_v58 = vsel %vm863_vm1, %v1308_v15, %v1311_v16 }
0x14ee   :  { %626 = vrot.lane.b32.xlu2 %v625_v52, %s1117_s3 }
0x14ef   :  { %v621_v53 = vpop.permute.xlu1 %620 }
0x14f0   :  { %623 = vst.msk [vmem:[#allocation5] sm:$0x3] %vm34_vm0, %v621_v53 }
0x14f1   :  { %604 = vrot.lane.b32.xlu0 %v1283_v60, %s1113_s5  ;;  %886 = dma.vmem_to_hbm [thread:$0]  %s882_s19, 32, %s884_s22, [#allocation6]  }
0x14f2   :  { %s892_s5 = sshll.u32 %s1126_s7, 4  ;;  %s893_s5 = int_to_ptr.vmem [resolvable:$true] %s892_s5 }
0x14f7   :  { %v612_v54 = vpop.permute.xlu1 %611 }
0x14f8   :  { %614 = vst.msk [vmem:[#allocation3] sm:$0x3] %vm34_vm0, %v612_v54 }
0x1540   :  { %v856_v55 = vpop.permute.xlu2 %855 }
0x1541   :  { %v861_v56 = vsub.f32 %v1300_v13, %v856_v55 }
0x1543   :  { %v867_v59 = vsel %vm866_vm9, %v864_v57, %v861_v56 }
0x1544   :  { %v870_v30 = vsel %vm869_vm10, %v867_v59, 0.0 }
0x1545   :  { %872 = vst [vmem:[%s1406_s6] sm:$0xff] %v870_v30 }
0x1548   :  { %v627_v60 = vpop.permute.xlu2 %626 }
0x1549   :  { %629 = vst.msk [vmem:[#allocation7] sm:$0x3] %vm34_vm0, %v627_v60 }
0x154a   :  { %897 = dma.vmem_to_hbm [thread:$0]  %s893_s5, 32, %s895_s25, [#allocation8]  }
0x155b   :  { %v858_v12 = vpop.permute.xlu0 %857 }
0x155c   :  { %v862_v13 = vsub.f32 %v1311_v16, %v858_v12 }
0x155e   :  { %v868_v61 = vsel %vm866_vm9, %v865_v58, %v862_v13 }
0x155f   :  { %v871_v62 = vsel %vm869_vm10, %v868_v61, 0.0 }
0x1560   :  { %873 = vst [vmem:[%s1406_s6 + $0x8] sm:$0xff] %v871_v62 }
0x1563   :  { %v605_v63 = vpop.permute.xlu0 %604 }
0x1564   :  { %607 = vst.msk [vmem:[#allocation2] sm:$0x3] %vm34_vm0, %v605_v63 }
0x1565   :  { %1108 = dma.done.wait [#allocation6], 32  }
0x1566   :  { %1109 = vsyncadd [#allocation6], 4294967264 }
0x1567   :  { %1110 = dma.done.wait [#allocation8], 32  }
0x1568   :  { %1111 = vsyncadd [#allocation8], 4294967264 }
0x1569   :  { %908 = vsyncpa [#allocation6], 1 }
0x156a   :  { %909 = vsyncpa [#allocation8], 1 }

</bundles_post_ra>
